<compile_context>
chip_gen: v6e
topology: v6e:2x2x1
jax: 0.10.0
libtpu: 0.0.40
codegen_flags: <defaults>
</compile_context>

<pallas_src>
import numpy as np
import jax
import jax.numpy as jnp
from jax.experimental import pallas as pl
from jax.experimental.pallas import tpu as pltpu

F_PAD = 128   # padded lane width for raw node / edge / global / action features
W1 = 256      # GN block-1 width
W2 = 128      # GN block-2 width


# ----------------------------- Pallas kernel --------------------------------
def qnetwork_kernel(
    nodes_ref, edges_ref, glb_ref, agg_ref, act_ref,
    w_e1_ref, b_e1_ref, w_n1_ref, b_n1_ref, w_g1_ref, b_g1_ref,
    w_e2_ref, b_e2_ref, w_n2_ref, b_n2_ref, w_g2_ref, b_g2_ref,
    w_ga_ref, b_ga_ref, w_h1_ref, b_h1_ref, w_h2_ref, b_h2_ref, w_h3_ref, b_h3_ref,
    q_ref,
):
    f32, bf16 = jnp.float32, jnp.bfloat16

    def dot(a, b):
        # MXU: bf16 operands, f32 accumulation.
        return jnp.dot(a.astype(bf16), b.astype(bf16), preferred_element_type=f32)

    relu = lambda x: jnp.maximum(x, 0.0)   # f32 epilogue

    nodes = nodes_ref[0]     # [N, F_PAD]     bf16
    edges = edges_ref[0]     # [E, F_PAD]     bf16
    glb   = glb_ref[0]       # [1, F_PAD]     bf16
    agg   = agg_ref[0]       # [2N+8, E]      bf16: rows = [in-mean | out-mean | 1/E | 0-pad]
    act   = act_ref[0]       # [1, F_PAD]     bf16
    n = nodes.shape[0]

    # ---- GN block 1 (width 256) ----
    e1 = relu(dot(edges, w_e1_ref[...]) + b_e1_ref[...])                 # [E, 256]
    agg_e1 = dot(agg, e1)                                                # [2N+8, 256]
    inc1, out1, e1_agg = agg_e1[:n], agg_e1[n:2 * n], agg_e1[2 * n:2 * n + 1]
    n1 = relu(dot(jnp.concatenate([nodes.astype(f32), inc1, out1], axis=-1),
                  w_n1_ref[...]) + b_n1_ref[...])                        # [N, 256]
    n1_agg = jnp.mean(n1, axis=0, keepdims=True)                         # [1, 256]
    g1 = relu(dot(jnp.concatenate([glb.astype(f32), n1_agg, e1_agg], axis=-1),
                  w_g1_ref[...]) + b_g1_ref[...])                        # [1, 256]

    # ---- GN block 2 (width 128) ----
    e2 = relu(dot(e1, w_e2_ref[...]) + b_e2_ref[...])                    # [E, 128]
    agg_e2 = dot(agg, e2)                                                # [2N+8, 128]
    inc2, out2, e2_agg = agg_e2[:n], agg_e2[n:2 * n], agg_e2[2 * n:2 * n + 1]
    n2 = relu(dot(jnp.concatenate([n1, inc2, out2], axis=-1),
                  w_n2_ref[...]) + b_n2_ref[...])                        # [N, 128]
    n2_agg = jnp.mean(n2, axis=0, keepdims=True)                         # [1, 128]
    g2 = relu(dot(jnp.concatenate([g1, n2_agg, e2_agg], axis=-1),
                  w_g2_ref[...]) + b_g2_ref[...])                        # [1, 128]

    # ---- Q head ----
    state_value = dot(g2, w_ga_ref[...]) + b_ga_ref[...]                 # [1, S], no ReLU
    sa = jnp.concatenate([state_value, act.astype(f32)], axis=-1)        # [1, S + F_PAD]
    h1 = relu(dot(sa, w_h1_ref[...]) + b_h1_ref[...])                    # [1, H]
    h2 = relu(dot(h1, w_h2_ref[...]) + b_h2_ref[...])                    # [1, H]
    q_ref[0] = dot(h2, w_h3_ref[...]) + b_h3_ref[...]                    # [1, 128], col 0 = Q


# ------------------------------ wrapper --------------------------------------
def qnetwork_forward(nodes, edges, glb, agg, act, params):
    B, N, fn = nodes.shape
    E = edges.shape[1]
    R = agg.shape[1]

    def data_spec(r, c):
        return pl.BlockSpec((1, r, c), lambda b: (b, 0, 0))

    def const_spec(arr):                       # weights: same block every grid step
        nd = arr.ndim
        return pl.BlockSpec(arr.shape, lambda b, _nd=nd: (0,) * _nd)

    in_specs = [
        data_spec(N, fn),
        data_spec(E, edges.shape[2]),
        data_spec(1, glb.shape[2]),
        data_spec(R, E),
        data_spec(1, act.shape[2]),
    ] + [const_spec(p) for p in params]

    q = pl.pallas_call(
        qnetwork_kernel,
        grid=(B,),
        out_shape=jax.ShapeDtypeStruct((B, 1, 128), jnp.float32),
        in_specs=in_specs,
        out_specs=pl.BlockSpec((1, 1, 128), lambda b: (b, 0, 0)),
        compiler_params=pltpu.CompilerParams(
            dimension_semantics=("parallel",),
            vmem_limit_bytes=32 * 1024 * 1024,
        ),
    )(nodes, edges, glb, act_dummy := act, *params) if False else pl.pallas_call(
        qnetwork_kernel,
        grid=(B,),
        out_shape=jax.ShapeDtypeStruct((B, 1, 128), jnp.float32),
        in_specs=in_specs,
        out_specs=pl.BlockSpec((1, 1, 128), lambda b: (b, 0, 0)),
        compiler_params=pltpu.CompilerParams(
            dimension_semantics=("parallel",),
            vmem_limit_bytes=32 * 1024 * 1024,
        ),
    )(nodes, edges, glb, agg, act, *params)
    return q[:, 0, :1]    # [B, 1]


# --------------------------- parameter setup ----------------------------------
def xavier(key, fan_in, fan_out):
    lim = float(np.sqrt(6.0 / (fan_in + fan_out)))
    return jax.random.uniform(key, (fan_in, fan_out), minval=-lim, maxval=lim,
                              dtype=jnp.float32)


def bias_init(key, fan_in, fan_out):
    k = float(1.0 / np.sqrt(fan_in))
    return jax.random.uniform(key, (1, fan_out), minval=-k, maxval=k, dtype=jnp.float32)


def build_params(key, f_node, f_edge, f_global, n_actions, s_out, hidden):
    """Logical (unpadded, unfused) parameters — torch Linear layout [in, out]."""
    ks = iter(jax.random.split(key, 20))
    P = {}
    P["w_e1"] = xavier(next(ks), f_edge, W1);              P["b_e1"] = bias_init(next(ks), f_edge, W1)
    P["w_n1"] = xavier(next(ks), f_node + 2 * W1, W1);     P["b_n1"] = bias_init(next(ks), f_node + 2 * W1, W1)
    P["w_g1"] = xavier(next(ks), f_global + 2 * W1, W1);   P["b_g1"] = bias_init(next(ks), f_global + 2 * W1, W1)
    P["w_e2"] = xavier(next(ks), W1, W2);                  P["b_e2"] = bias_init(next(ks), W1, W2)
    P["w_n2"] = xavier(next(ks), W1 + 2 * W2, W2);         P["b_n2"] = bias_init(next(ks), W1 + 2 * W2, W2)
    P["w_g2"] = xavier(next(ks), W1 + 2 * W2, W2);         P["b_g2"] = bias_init(next(ks), W1 + 2 * W2, W2)
    P["w_ga"] = xavier(next(ks), W2, s_out);               P["b_ga"] = bias_init(next(ks), W2, s_out)
    P["w_h1"] = xavier(next(ks), s_out + n_actions, hidden); P["b_h1"] = bias_init(next(ks), s_out + n_actions, hidden)
    P["w_h2"] = xavier(next(ks), hidden, hidden);          P["b_h2"] = bias_init(next(ks), hidden, hidden)
    P["w_h3"] = xavier(next(ks), hidden, 1);               P["b_h3"] = bias_init(next(ks), hidden, 1)
    return P


def pack_kernel_params(P, f_node, f_edge, f_global, n_actions, s_out, hidden):
    """Embed logical weights into lane/sublane-padded fused layouts; bf16 weights, f32 biases."""
    w_e1 = np.zeros((F_PAD, W1), np.float32); w_e1[:f_edge] = np.asarray(P["w_e1"])

    w_n1 = np.zeros((F_PAD + 2 * W1, W1), np.float32)
    w_n1[:f_node] = np.asarray(P["w_n1"][:f_node])
    w_n1[F_PAD:] = np.asarray(P["w_n1"][f_node:])          # [incoming ; outgoing] rows

    w_g1 = np.zeros((F_PAD + 2 * W1, W1), np.float32)
    w_g1[:f_global] = np.asarray(P["w_g1"][:f_global])
    w_g1[F_PAD:] = np.asarray(P["w_g1"][f_global:])        # [node-agg ; edge-agg] rows

    w_e2 = np.asarray(P["w_e2"])
    w_n2 = np.asarray(P["w_n2"])                            # already lane-aligned (256|128|128)
    w_g2 = np.asarray(P["w_g2"])
    w_ga = np.asarray(P["w_ga"])                            # s_out chosen lane-aligned

    w_h1 = np.zeros((s_out + F_PAD, hidden), np.float32)
    w_h1[:s_out] = np.asarray(P["w_h1"][:s_out])
    w_h1[s_out:s_out + n_actions] = np.asarray(P["w_h1"][s_out:])
    w_h2 = np.asarray(P["w_h2"])

    w_h3 = np.zeros((hidden, 128), np.float32); w_h3[:, :1] = np.asarray(P["w_h3"])
    b_h3 = np.zeros((1, 128), np.float32);      b_h3[:, :1] = np.asarray(P["b_h3"])

    pairs = [
        (w_e1, P["b_e1"]), (w_n1, P["b_n1"]), (w_g1, P["b_g1"]),
        (w_e2, P["b_e2"]), (w_n2, P["b_n2"]), (w_g2, P["b_g2"]),
        (w_ga, P["b_ga"]), (w_h1, P["b_h1"]), (w_h2, P["b_h2"]), (w_h3, b_h3),
    ]
    out = []
    for w, b in pairs:
        out.append(jnp.asarray(w, jnp.bfloat16))   # MXU operand
        out.append(jnp.asarray(b, jnp.float32))    # f32 epilogue
    return tuple(out)


def build_agg(senders, receivers, num_nodes, num_edges):
    """[B, 2N+8, E]: rows 0:N incoming-mean, N:2N outgoing-mean, row 2N = 1/E, rest zero."""
    B = senders.shape[0]
    R = 2 * num_nodes + 8
    agg = np.zeros((B, R, num_edges), np.float32)
    e_ids = np.arange(num_edges)
    for b in range(B):
        r = np.zeros((num_nodes, num_edges), np.float32)
        s = np.zeros((num_nodes, num_edges), np.float32)
        r[receivers[b], e_ids] = 1.0
        s[senders[b], e_ids] = 1.0
        r /= np.maximum(r.sum(1, keepdims=True), 1.0)   # deg-0 safe incoming mean
        s /= np.maximum(s.sum(1, keepdims=True), 1.0)   # deg-0 safe outgoing mean
        agg[b, :num_nodes] = r
        agg[b, num_nodes:2 * num_nodes] = s
        agg[b, 2 * num_nodes] = 1.0 / num_edges         # folded edge-mean row
    return agg


def pad_lanes(x, width):
    return jnp.pad(x, [(0, 0)] * (x.ndim - 1) + [(0, width - x.shape[-1])])


# ------------------------- pure-JAX reference ---------------------------------
def reference(nodes, edges, glb, act, rnorm, snorm, P):
    """Original (unfused) QNetwork math; matmul operands rounded to bf16 like the MXU path."""
    f32, bf16 = jnp.float32, jnp.bfloat16

    def mm(a, b):
        return jnp.dot(a.astype(bf16).astype(f32), b.astype(bf16).astype(f32))

    relu = lambda x: jnp.maximum(x, 0.0)
    B, _, _ = nodes.shape
    E = edges.shape[1]
    emean = jnp.full((1, E), 1.0 / E, f32)

    qs = []
    for b in range(B):
        n, e, g, a = nodes[b], edges[b], glb[b], act[b]
        rn, sn = rnorm[b], snorm[b]
        e1 = relu(mm(e, P["w_e1"]) + P["b_e1"])
        n1 = relu(mm(jnp.concatenate([n, mm(rn, e1), mm(sn, e1)], -1), P["w_n1"]) + P["b_n1"])
        g1 = relu(mm(jnp.concatenate([g, jnp.mean(n1, 0, keepdims=True), mm(emean, e1)], -1),
                     P["w_g1"]) + P["b_g1"])
        e2 = relu(mm(e1, P["w_e2"]) + P["b_e2"])
        n2 = relu(mm(jnp.concatenate([n1, mm(rn, e2), mm(sn, e2)], -1), P["w_n2"]) + P["b_n2"])
        g2 = relu(mm(jnp.concatenate([g1, jnp.mean(n2, 0, keepdims=True), mm(emean, e2)], -1),
                     P["w_g2"]) + P["b_g2"])
        sv = mm(g2, P["w_ga"]) + P["b_ga"]                       # no ReLU
        sa = jnp.concatenate([sv, a], -1)
        h1 = relu(mm(sa, P["w_h1"]) + P["b_h1"])
        h2 = relu(mm(h1, P["w_h2"]) + P["b_h2"])
        qs.append(mm(h2, P["w_h3"]) + P["b_h3"])                 # [1, 1]
    return jnp.concatenate(qs, axis=0)                           # [B, 1]


# ---------------------------------- main --------------------------------------
if __name__ == "__main__":
    B = 4                              # batch of graphs (grid axis, 'parallel')
    N, E = 8, 16                       # nodes, edges per graph
    F_NODE = F_EDGE = F_GLOBAL = 4
    NUM_ACTIONS = 4
    STATE_OUT = 128                    # state_output_size (lane-aligned)
    HIDDEN = 128                       # hidden_action_size

    key = jax.random.PRNGKey(0)
    k_n, k_e, k_g, k_a, k_s, k_r, k_p = jax.random.split(key, 7)

    nodes = jax.random.normal(k_n, (B, N, F_NODE), dtype=jnp.float32)
    edges = jax.random.normal(k_e, (B, E, F_EDGE), dtype=jnp.float32)
    glb = jax.random.normal(k_g, (B, 1, F_GLOBAL), dtype=jnp.float32)
    act = jax.random.normal(k_a, (B, 1, NUM_ACTIONS), dtype=jnp.float32)

    senders = np.asarray(jax.random.randint(k_s, (B, E), 0, N))
    receivers = np.asarray(jax.random.randint(k_r, (B, E), 0, N))
    agg_np = build_agg(senders, receivers, N, E)

    P = build_params(k_p, F_NODE, F_EDGE, F_GLOBAL, NUM_ACTIONS, STATE_OUT, HIDDEN)
    kparams = pack_kernel_params(P, F_NODE, F_EDGE, F_GLOBAL, NUM_ACTIONS, STATE_OUT, HIDDEN)

    nodes_p = pad_lanes(nodes, F_PAD).astype(jnp.bfloat16)
    edges_p = pad_lanes(edges, F_PAD).astype(jnp.bfloat16)
    glb_p = pad_lanes(glb, F_PAD).astype(jnp.bfloat16)
    act_p = pad_lanes(act, F_PAD).astype(jnp.bfloat16)
    agg = jnp.asarray(agg_np, jnp.bfloat16)

    q = qnetwork_forward(nodes_p, edges_p, glb_p, agg, act_p, kparams)
    jax.block_until_ready(q)

    # NOTE: mean aggregations use the true N / E (no entity padding in this demo); if
    # entities are ever padded, the 1/E row and node-mean must use the real counts.
    rnorm = jnp.asarray(agg_np[:, :N, :], jnp.float32)
    snorm = jnp.asarray(agg_np[:, N:2 * N, :], jnp.float32)
    q_ref = reference(nodes, edges, glb, act, rnorm, snorm, P)

    assert q.shape == (B, 1)
    assert np.allclose(np.asarray(q), np.asarray(q_ref), atol=1e-2, rtol=1e-2), (
        float(np.max(np.abs(np.asarray(q) - np.asarray(q_ref)))))
    print("KERNEL_OK")
</pallas_src>

<mosaic_0001>
module attributes {stable_mosaic.version = 11 : i64} {
  func.func @qnetwork_kernel(%arg0: i32, %arg1: memref<1x8x128xbf16, #tpu.memory_space<vmem>>, %arg2: memref<1x16x128xbf16, #tpu.memory_space<vmem>>, %arg3: memref<1x1x128xbf16, #tpu.memory_space<vmem>>, %arg4: memref<1x24x16xbf16, #tpu.memory_space<vmem>>, %arg5: memref<1x1x128xbf16, #tpu.memory_space<vmem>>, %arg6: memref<128x256xbf16, #tpu.memory_space<vmem>>, %arg7: memref<1x256xf32, #tpu.memory_space<vmem>>, %arg8: memref<640x256xbf16, #tpu.memory_space<vmem>>, %arg9: memref<1x256xf32, #tpu.memory_space<vmem>>, %arg10: memref<640x256xbf16, #tpu.memory_space<vmem>>, %arg11: memref<1x256xf32, #tpu.memory_space<vmem>>, %arg12: memref<256x128xbf16, #tpu.memory_space<vmem>>, %arg13: memref<1x128xf32, #tpu.memory_space<vmem>>, %arg14: memref<512x128xbf16, #tpu.memory_space<vmem>>, %arg15: memref<1x128xf32, #tpu.memory_space<vmem>>, %arg16: memref<512x128xbf16, #tpu.memory_space<vmem>>, %arg17: memref<1x128xf32, #tpu.memory_space<vmem>>, %arg18: memref<128x128xbf16, #tpu.memory_space<vmem>>, %arg19: memref<1x128xf32, #tpu.memory_space<vmem>>, %arg20: memref<256x128xbf16, #tpu.memory_space<vmem>>, %arg21: memref<1x128xf32, #tpu.memory_space<vmem>>, %arg22: memref<128x128xbf16, #tpu.memory_space<vmem>>, %arg23: memref<1x128xf32, #tpu.memory_space<vmem>>, %arg24: memref<128x128xbf16, #tpu.memory_space<vmem>>, %arg25: memref<1x128xf32, #tpu.memory_space<vmem>>, %arg26: memref<1x1x128xf32, #tpu.memory_space<vmem>>) attributes {dimension_semantics = [#tpu.dimension_semantics<parallel>], iteration_bounds = array<i64: 4>, scalar_prefetch = 0 : i64, scratch_operands = 0 : i64, tpu.core_type = #tpu.core_type<tc>, window_params = [{transform_indices = @transform_0, window_bounds = array<i64: 1, 8, 128>}, {transform_indices = @transform_1, window_bounds = array<i64: 1, 16, 128>}, {transform_indices = @transform_2, window_bounds = array<i64: 1, 1, 128>}, {transform_indices = @transform_3, window_bounds = array<i64: 1, 24, 16>}, {transform_indices = @transform_4, window_bounds = array<i64: 1, 1, 128>}, {pipeline_mode = #tpu.pipeline_mode<synchronous>, transform_indices = @transform_5, window_bounds = array<i64: 128, 256>}, {pipeline_mode = #tpu.pipeline_mode<synchronous>, transform_indices = @transform_6, window_bounds = array<i64: 1, 256>}, {pipeline_mode = #tpu.pipeline_mode<synchronous>, transform_indices = @transform_7, window_bounds = array<i64: 640, 256>}, {pipeline_mode = #tpu.pipeline_mode<synchronous>, transform_indices = @transform_8, window_bounds = array<i64: 1, 256>}, {pipeline_mode = #tpu.pipeline_mode<synchronous>, transform_indices = @transform_9, window_bounds = array<i64: 640, 256>}, {pipeline_mode = #tpu.pipeline_mode<synchronous>, transform_indices = @transform_10, window_bounds = array<i64: 1, 256>}, {pipeline_mode = #tpu.pipeline_mode<synchronous>, transform_indices = @transform_11, window_bounds = array<i64: 256, 128>}, {pipeline_mode = #tpu.pipeline_mode<synchronous>, transform_indices = @transform_12, window_bounds = array<i64: 1, 128>}, {pipeline_mode = #tpu.pipeline_mode<synchronous>, transform_indices = @transform_13, window_bounds = array<i64: 512, 128>}, {pipeline_mode = #tpu.pipeline_mode<synchronous>, transform_indices = @transform_14, window_bounds = array<i64: 1, 128>}, {pipeline_mode = #tpu.pipeline_mode<synchronous>, transform_indices = @transform_15, window_bounds = array<i64: 512, 128>}, {pipeline_mode = #tpu.pipeline_mode<synchronous>, transform_indices = @transform_16, window_bounds = array<i64: 1, 128>}, {pipeline_mode = #tpu.pipeline_mode<synchronous>, transform_indices = @transform_17, window_bounds = array<i64: 128, 128>}, {pipeline_mode = #tpu.pipeline_mode<synchronous>, transform_indices = @transform_18, window_bounds = array<i64: 1, 128>}, {pipeline_mode = #tpu.pipeline_mode<synchronous>, transform_indices = @transform_19, window_bounds = array<i64: 256, 128>}, {pipeline_mode = #tpu.pipeline_mode<synchronous>, transform_indices = @transform_20, window_bounds = array<i64: 1, 128>}, {pipeline_mode = #tpu.pipeline_mode<synchronous>, transform_indices = @transform_21, window_bounds = array<i64: 128, 128>}, {pipeline_mode = #tpu.pipeline_mode<synchronous>, transform_indices = @transform_22, window_bounds = array<i64: 1, 128>}, {pipeline_mode = #tpu.pipeline_mode<synchronous>, transform_indices = @transform_23, window_bounds = array<i64: 128, 128>}, {pipeline_mode = #tpu.pipeline_mode<synchronous>, transform_indices = @transform_24, window_bounds = array<i64: 1, 128>}, {transform_indices = @transform_25, window_bounds = array<i64: 1, 1, 128>}]} {
    %c0 = arith.constant 0 : index
    %c0_0 = arith.constant 0 : index
    %c0_1 = arith.constant 0 : index
    %0 = vector.load %arg1[%c0, %c0_0, %c0_1] : memref<1x8x128xbf16, #tpu.memory_space<vmem>>, vector<1x8x128xbf16>
    %1 = vector.shape_cast %0 : vector<1x8x128xbf16> to vector<8x128xbf16>
    %c0_2 = arith.constant 0 : index
    %c0_3 = arith.constant 0 : index
    %c0_4 = arith.constant 0 : index
    %2 = vector.load %arg2[%c0_2, %c0_3, %c0_4] : memref<1x16x128xbf16, #tpu.memory_space<vmem>>, vector<1x16x128xbf16>
    %3 = vector.shape_cast %2 : vector<1x16x128xbf16> to vector<16x128xbf16>
    %c0_5 = arith.constant 0 : index
    %c0_6 = arith.constant 0 : index
    %c0_7 = arith.constant 0 : index
    %4 = vector.load %arg3[%c0_5, %c0_6, %c0_7] : memref<1x1x128xbf16, #tpu.memory_space<vmem>>, vector<1x1x128xbf16>
    %5 = vector.shape_cast %4 : vector<1x1x128xbf16> to vector<1x128xbf16>
    %c0_8 = arith.constant 0 : index
    %c0_9 = arith.constant 0 : index
    %c0_10 = arith.constant 0 : index
    %6 = vector.load %arg4[%c0_8, %c0_9, %c0_10] : memref<1x24x16xbf16, #tpu.memory_space<vmem>>, vector<1x24x16xbf16>
    %7 = vector.shape_cast %6 : vector<1x24x16xbf16> to vector<24x16xbf16>
    %c0_11 = arith.constant 0 : index
    %c0_12 = arith.constant 0 : index
    %c0_13 = arith.constant 0 : index
    %8 = vector.load %arg5[%c0_11, %c0_12, %c0_13] : memref<1x1x128xbf16, #tpu.memory_space<vmem>>, vector<1x1x128xbf16>
    %9 = vector.shape_cast %8 : vector<1x1x128xbf16> to vector<1x128xbf16>
    %c0_14 = arith.constant 0 : index
    %c0_15 = arith.constant 0 : index
    %10 = vector.load %arg6[%c0_14, %c0_15] : memref<128x256xbf16, #tpu.memory_space<vmem>>, vector<128x256xbf16>
    %cst = arith.constant dense<0.000000e+00> : vector<16x256xf32>
    %11 = tpu.matmul %3, %10, %cst {dimension_numbers = #tpu.dot_dimension_numbers<[1], [0], [0], [1], [0, 0, 1, 1], [], []>} : vector<16x128xbf16>, vector<128x256xbf16>, vector<16x256xf32> -> vector<16x256xf32>
    %c0_16 = arith.constant 0 : index
    %c0_17 = arith.constant 0 : index
    %12 = vector.load %arg7[%c0_16, %c0_17] : memref<1x256xf32, #tpu.memory_space<vmem>>, vector<1x256xf32>
    %13 = vector.broadcast %12 : vector<1x256xf32> to vector<16x256xf32>
    %14 = arith.addf %11, %13 : vector<16x256xf32>
    %cst_18 = arith.constant 0.000000e+00 : f32
    %15 = vector.broadcast %cst_18 : f32 to vector<16x256xf32>
    %16 = arith.maximumf %14, %15 : vector<16x256xf32>
    %17 = arith.truncf %16 : vector<16x256xf32> to vector<16x256xbf16>
    %cst_19 = arith.constant dense<0.000000e+00> : vector<24x256xf32>
    %18 = tpu.matmul %7, %17, %cst_19 {dimension_numbers = #tpu.dot_dimension_numbers<[1], [0], [0], [1], [0, 0, 1, 1], [], []>} : vector<24x16xbf16>, vector<16x256xbf16>, vector<24x256xf32> -> vector<24x256xf32>
    %19 = vector.extract_strided_slice %18 {offsets = [0, 0], sizes = [8, 256], strides = [1, 1]} : vector<24x256xf32> to vector<8x256xf32>
    %20 = vector.extract_strided_slice %18 {offsets = [8, 0], sizes = [8, 256], strides = [1, 1]} : vector<24x256xf32> to vector<8x256xf32>
    %21 = vector.extract_strided_slice %18 {offsets = [16, 0], sizes = [1, 256], strides = [1, 1]} : vector<24x256xf32> to vector<1x256xf32>
    %22 = arith.extf %1 : vector<8x128xbf16> to vector<8x128xf32>
    %23 = tpu.concatenate %22, %19, %20 in 1 : vector<8x128xf32>, vector<8x256xf32>, vector<8x256xf32> -> vector<8x640xf32>
    %c0_20 = arith.constant 0 : index
    %c0_21 = arith.constant 0 : index
    %24 = vector.load %arg8[%c0_20, %c0_21] : memref<640x256xbf16, #tpu.memory_space<vmem>>, vector<640x256xbf16>
    %25 = arith.truncf %23 : vector<8x640xf32> to vector<8x640xbf16>
    %cst_22 = arith.constant dense<0.000000e+00> : vector<8x256xf32>
    %26 = tpu.matmul %25, %24, %cst_22 {dimension_numbers = #tpu.dot_dimension_numbers<[1], [0], [0], [1], [0, 0, 1, 1], [], []>} : vector<8x640xbf16>, vector<640x256xbf16>, vector<8x256xf32> -> vector<8x256xf32>
    %c0_23 = arith.constant 0 : index
    %c0_24 = arith.constant 0 : index
    %27 = vector.load %arg9[%c0_23, %c0_24] : memref<1x256xf32, #tpu.memory_space<vmem>>, vector<1x256xf32>
    %28 = vector.broadcast %27 : vector<1x256xf32> to vector<8x256xf32>
    %29 = arith.addf %26, %28 : vector<8x256xf32>
    %cst_25 = arith.constant 0.000000e+00 : f32
    %30 = vector.broadcast %cst_25 : f32 to vector<8x256xf32>
    %31 = arith.maximumf %29, %30 : vector<8x256xf32>
    %cst_26 = arith.constant dense<0.000000e+00> : vector<256xf32>
    %32 = vector.multi_reduction <add>, %31, %cst_26 [0] : vector<8x256xf32> to vector<256xf32>
    %33 = vector.shape_cast %32 : vector<256xf32> to vector<1x256xf32>
    %cst_27 = arith.constant 8.000000e+00 : f32
    %34 = vector.broadcast %cst_27 : f32 to vector<1x256xf32>
    %35 = arith.divf %33, %34 : vector<1x256xf32>
    %36 = arith.extf %5 : vector<1x128xbf16> to vector<1x128xf32>
    %37 = tpu.concatenate %36, %35, %21 in 1 : vector<1x128xf32>, vector<1x256xf32>, vector<1x256xf32> -> vector<1x640xf32>
    %c0_28 = arith.constant 0 : index
    %c0_29 = arith.constant 0 : index
    %38 = vector.load %arg10[%c0_28, %c0_29] : memref<640x256xbf16, #tpu.memory_space<vmem>>, vector<640x256xbf16>
    %39 = arith.truncf %37 : vector<1x640xf32> to vector<1x640xbf16>
    %cst_30 = arith.constant dense<0.000000e+00> : vector<1x256xf32>
    %40 = tpu.matmul %39, %38, %cst_30 {dimension_numbers = #tpu.dot_dimension_numbers<[1], [0], [0], [1], [0, 0, 1, 1], [], []>} : vector<1x640xbf16>, vector<640x256xbf16>, vector<1x256xf32> -> vector<1x256xf32>
    %c0_31 = arith.constant 0 : index
    %c0_32 = arith.constant 0 : index
    %41 = vector.load %arg11[%c0_31, %c0_32] : memref<1x256xf32, #tpu.memory_space<vmem>>, vector<1x256xf32>
    %42 = arith.addf %40, %41 : vector<1x256xf32>
    %cst_33 = arith.constant 0.000000e+00 : f32
    %43 = vector.broadcast %cst_33 : f32 to vector<1x256xf32>
    %44 = arith.maximumf %42, %43 : vector<1x256xf32>
    %c0_34 = arith.constant 0 : index
    %c0_35 = arith.constant 0 : index
    %45 = vector.load %arg12[%c0_34, %c0_35] : memref<256x128xbf16, #tpu.memory_space<vmem>>, vector<256x128xbf16>
    %46 = arith.truncf %16 : vector<16x256xf32> to vector<16x256xbf16>
    %cst_36 = arith.constant dense<0.000000e+00> : vector<16x128xf32>
    %47 = tpu.matmul %46, %45, %cst_36 {dimension_numbers = #tpu.dot_dimension_numbers<[1], [0], [0], [1], [0, 0, 1, 1], [], []>} : vector<16x256xbf16>, vector<256x128xbf16>, vector<16x128xf32> -> vector<16x128xf32>
    %c0_37 = arith.constant 0 : index
    %c0_38 = arith.constant 0 : index
    %48 = vector.load %arg13[%c0_37, %c0_38] : memref<1x128xf32, #tpu.memory_space<vmem>>, vector<1x128xf32>
    %49 = vector.broadcast %48 : vector<1x128xf32> to vector<16x128xf32>
    %50 = arith.addf %47, %49 : vector<16x128xf32>
    %cst_39 = arith.constant 0.000000e+00 : f32
    %51 = vector.broadcast %cst_39 : f32 to vector<16x128xf32>
    %52 = arith.maximumf %50, %51 : vector<16x128xf32>
    %53 = arith.truncf %52 : vector<16x128xf32> to vector<16x128xbf16>
    %cst_40 = arith.constant dense<0.000000e+00> : vector<24x128xf32>
    %54 = tpu.matmul %7, %53, %cst_40 {dimension_numbers = #tpu.dot_dimension_numbers<[1], [0], [0], [1], [0, 0, 1, 1], [], []>} : vector<24x16xbf16>, vector<16x128xbf16>, vector<24x128xf32> -> vector<24x128xf32>
    %55 = vector.extract_strided_slice %54 {offsets = [0, 0], sizes = [8, 128], strides = [1, 1]} : vector<24x128xf32> to vector<8x128xf32>
    %56 = vector.extract_strided_slice %54 {offsets = [8, 0], sizes = [8, 128], strides = [1, 1]} : vector<24x128xf32> to vector<8x128xf32>
    %57 = vector.extract_strided_slice %54 {offsets = [16, 0], sizes = [1, 128], strides = [1, 1]} : vector<24x128xf32> to vector<1x128xf32>
    %58 = tpu.concatenate %31, %55, %56 in 1 : vector<8x256xf32>, vector<8x128xf32>, vector<8x128xf32> -> vector<8x512xf32>
    %c0_41 = arith.constant 0 : index
    %c0_42 = arith.constant 0 : index
    %59 = vector.load %arg14[%c0_41, %c0_42] : memref<512x128xbf16, #tpu.memory_space<vmem>>, vector<512x128xbf16>
    %60 = arith.truncf %58 : vector<8x512xf32> to vector<8x512xbf16>
    %cst_43 = arith.constant dense<0.000000e+00> : vector<8x128xf32>
    %61 = tpu.matmul %60, %59, %cst_43 {dimension_numbers = #tpu.dot_dimension_numbers<[1], [0], [0], [1], [0, 0, 1, 1], [], []>} : vector<8x512xbf16>, vector<512x128xbf16>, vector<8x128xf32> -> vector<8x128xf32>
    %c0_44 = arith.constant 0 : index
    %c0_45 = arith.constant 0 : index
    %62 = vector.load %arg15[%c0_44, %c0_45] : memref<1x128xf32, #tpu.memory_space<vmem>>, vector<1x128xf32>
    %63 = vector.broadcast %62 : vector<1x128xf32> to vector<8x128xf32>
    %64 = arith.addf %61, %63 : vector<8x128xf32>
    %cst_46 = arith.constant 0.000000e+00 : f32
    %65 = vector.broadcast %cst_46 : f32 to vector<8x128xf32>
    %66 = arith.maximumf %64, %65 : vector<8x128xf32>
    %cst_47 = arith.constant dense<0.000000e+00> : vector<128xf32>
    %67 = vector.multi_reduction <add>, %66, %cst_47 [0] : vector<8x128xf32> to vector<128xf32>
    %68 = vector.shape_cast %67 : vector<128xf32> to vector<1x128xf32>
    %cst_48 = arith.constant 8.000000e+00 : f32
    %69 = vector.broadcast %cst_48 : f32 to vector<1x128xf32>
    %70 = arith.divf %68, %69 : vector<1x128xf32>
    %71 = tpu.concatenate %44, %70, %57 in 1 : vector<1x256xf32>, vector<1x128xf32>, vector<1x128xf32> -> vector<1x512xf32>
    %c0_49 = arith.constant 0 : index
    %c0_50 = arith.constant 0 : index
    %72 = vector.load %arg16[%c0_49, %c0_50] : memref<512x128xbf16, #tpu.memory_space<vmem>>, vector<512x128xbf16>
    %73 = arith.truncf %71 : vector<1x512xf32> to vector<1x512xbf16>
    %cst_51 = arith.constant dense<0.000000e+00> : vector<1x128xf32>
    %74 = tpu.matmul %73, %72, %cst_51 {dimension_numbers = #tpu.dot_dimension_numbers<[1], [0], [0], [1], [0, 0, 1, 1], [], []>} : vector<1x512xbf16>, vector<512x128xbf16>, vector<1x128xf32> -> vector<1x128xf32>
    %c0_52 = arith.constant 0 : index
    %c0_53 = arith.constant 0 : index
    %75 = vector.load %arg17[%c0_52, %c0_53] : memref<1x128xf32, #tpu.memory_space<vmem>>, vector<1x128xf32>
    %76 = arith.addf %74, %75 : vector<1x128xf32>
    %cst_54 = arith.constant 0.000000e+00 : f32
    %77 = vector.broadcast %cst_54 : f32 to vector<1x128xf32>
    %78 = arith.maximumf %76, %77 : vector<1x128xf32>
    %c0_55 = arith.constant 0 : index
    %c0_56 = arith.constant 0 : index
    %79 = vector.load %arg18[%c0_55, %c0_56] : memref<128x128xbf16, #tpu.memory_space<vmem>>, vector<128x128xbf16>
    %80 = arith.truncf %78 : vector<1x128xf32> to vector<1x128xbf16>
    %cst_57 = arith.constant dense<0.000000e+00> : vector<1x128xf32>
    %81 = tpu.matmul %80, %79, %cst_57 {dimension_numbers = #tpu.dot_dimension_numbers<[1], [0], [0], [1], [0, 0, 1, 1], [], []>} : vector<1x128xbf16>, vector<128x128xbf16>, vector<1x128xf32> -> vector<1x128xf32>
    %c0_58 = arith.constant 0 : index
    %c0_59 = arith.constant 0 : index
    %82 = vector.load %arg19[%c0_58, %c0_59] : memref<1x128xf32, #tpu.memory_space<vmem>>, vector<1x128xf32>
    %83 = arith.addf %81, %82 : vector<1x128xf32>
    %84 = arith.extf %9 : vector<1x128xbf16> to vector<1x128xf32>
    %85 = tpu.concatenate %83, %84 in 1 : vector<1x128xf32>, vector<1x128xf32> -> vector<1x256xf32>
    %c0_60 = arith.constant 0 : index
    %c0_61 = arith.constant 0 : index
    %86 = vector.load %arg20[%c0_60, %c0_61] : memref<256x128xbf16, #tpu.memory_space<vmem>>, vector<256x128xbf16>
    %87 = arith.truncf %85 : vector<1x256xf32> to vector<1x256xbf16>
    %cst_62 = arith.constant dense<0.000000e+00> : vector<1x128xf32>
    %88 = tpu.matmul %87, %86, %cst_62 {dimension_numbers = #tpu.dot_dimension_numbers<[1], [0], [0], [1], [0, 0, 1, 1], [], []>} : vector<1x256xbf16>, vector<256x128xbf16>, vector<1x128xf32> -> vector<1x128xf32>
    %c0_63 = arith.constant 0 : index
    %c0_64 = arith.constant 0 : index
    %89 = vector.load %arg21[%c0_63, %c0_64] : memref<1x128xf32, #tpu.memory_space<vmem>>, vector<1x128xf32>
    %90 = arith.addf %88, %89 : vector<1x128xf32>
    %cst_65 = arith.constant 0.000000e+00 : f32
    %91 = vector.broadcast %cst_65 : f32 to vector<1x128xf32>
    %92 = arith.maximumf %90, %91 : vector<1x128xf32>
    %c0_66 = arith.constant 0 : index
    %c0_67 = arith.constant 0 : index
    %93 = vector.load %arg22[%c0_66, %c0_67] : memref<128x128xbf16, #tpu.memory_space<vmem>>, vector<128x128xbf16>
    %94 = arith.truncf %92 : vector<1x128xf32> to vector<1x128xbf16>
    %cst_68 = arith.constant dense<0.000000e+00> : vector<1x128xf32>
    %95 = tpu.matmul %94, %93, %cst_68 {dimension_numbers = #tpu.dot_dimension_numbers<[1], [0], [0], [1], [0, 0, 1, 1], [], []>} : vector<1x128xbf16>, vector<128x128xbf16>, vector<1x128xf32> -> vector<1x128xf32>
    %c0_69 = arith.constant 0 : index
    %c0_70 = arith.constant 0 : index
    %96 = vector.load %arg23[%c0_69, %c0_70] : memref<1x128xf32, #tpu.memory_space<vmem>>, vector<1x128xf32>
    %97 = arith.addf %95, %96 : vector<1x128xf32>
    %cst_71 = arith.constant 0.000000e+00 : f32
    %98 = vector.broadcast %cst_71 : f32 to vector<1x128xf32>
    %99 = arith.maximumf %97, %98 : vector<1x128xf32>
    %c0_72 = arith.constant 0 : index
    %c0_73 = arith.constant 0 : index
    %100 = vector.load %arg24[%c0_72, %c0_73] : memref<128x128xbf16, #tpu.memory_space<vmem>>, vector<128x128xbf16>
    %101 = arith.truncf %99 : vector<1x128xf32> to vector<1x128xbf16>
    %cst_74 = arith.constant dense<0.000000e+00> : vector<1x128xf32>
    %102 = tpu.matmul %101, %100, %cst_74 {dimension_numbers = #tpu.dot_dimension_numbers<[1], [0], [0], [1], [0, 0, 1, 1], [], []>} : vector<1x128xbf16>, vector<128x128xbf16>, vector<1x128xf32> -> vector<1x128xf32>
    %c0_75 = arith.constant 0 : index
    %c0_76 = arith.constant 0 : index
    %103 = vector.load %arg25[%c0_75, %c0_76] : memref<1x128xf32, #tpu.memory_space<vmem>>, vector<1x128xf32>
    %104 = arith.addf %102, %103 : vector<1x128xf32>
    %c0_77 = arith.constant 0 : index
    %c0_78 = arith.constant 0 : index
    %c0_79 = arith.constant 0 : index
    %105 = vector.load %arg26[%c0_77, %c0_78, %c0_79] : memref<1x1x128xf32, #tpu.memory_space<vmem>>, vector<1x1x128xf32>
    %106 = vector.shape_cast %105 : vector<1x1x128xf32> to vector<1x128xf32>
    %107 = vector.shape_cast %104 : vector<1x128xf32> to vector<1x1x128xf32>
    tpu.vector_store %arg26[%c0_77, %c0_78, %c0_79], %107 {strides = array<i32>} : memref<1x1x128xf32, #tpu.memory_space<vmem>>, vector<1x1x128xf32>,
    return
  }
  func.func @transform_0(%arg0: i32) -> (i32, i32, i32) {
    %c0_i32 = arith.constant 0 : i32
    %c0_i32_0 = arith.constant 0 : i32
    %c0_i32_1 = arith.constant 0 : i32
    return %arg0, %c0_i32, %c0_i32_0 : i32, i32, i32
  }
  func.func @transform_1(%arg0: i32) -> (i32, i32, i32) {
    %c0_i32 = arith.constant 0 : i32
    %c0_i32_0 = arith.constant 0 : i32
    %c0_i32_1 = arith.constant 0 : i32
    return %arg0, %c0_i32, %c0_i32_0 : i32, i32, i32
  }
  func.func @transform_2(%arg0: i32) -> (i32, i32, i32) {
    %c0_i32 = arith.constant 0 : i32
    %c0_i32_0 = arith.constant 0 : i32
    %c0_i32_1 = arith.constant 0 : i32
    return %arg0, %c0_i32, %c0_i32_0 : i32, i32, i32
  }
  func.func @transform_3(%arg0: i32) -> (i32, i32, i32) {
    %c0_i32 = arith.constant 0 : i32
    %c0_i32_0 = arith.constant 0 : i32
    %c0_i32_1 = arith.constant 0 : i32
    return %arg0, %c0_i32, %c0_i32_0 : i32, i32, i32
  }
  func.func @transform_4(%arg0: i32) -> (i32, i32, i32) {
    %c0_i32 = arith.constant 0 : i32
    %c0_i32_0 = arith.constant 0 : i32
    %c0_i32_1 = arith.constant 0 : i32
    return %arg0, %c0_i32, %c0_i32_0 : i32, i32, i32
  }
  func.func @transform_5(%arg0: i32) -> (i32, i32) {
    %c0_i32 = arith.constant 0 : i32
    %c0_i32_0 = arith.constant 0 : i32
    %c0_i32_1 = arith.constant 0 : i32
    return %c0_i32, %c0_i32_0 : i32, i32
  }
  func.func @transform_6(%arg0: i32) -> (i32, i32) {
    %c0_i32 = arith.constant 0 : i32
    %c0_i32_0 = arith.constant 0 : i32
    %c0_i32_1 = arith.constant 0 : i32
    return %c0_i32, %c0_i32_0 : i32, i32
  }
  func.func @transform_7(%arg0: i32) -> (i32, i32) {
    %c0_i32 = arith.constant 0 : i32
    %c0_i32_0 = arith.constant 0 : i32
    %c0_i32_1 = arith.constant 0 : i32
    return %c0_i32, %c0_i32_0 : i32, i32
  }
  func.func @transform_8(%arg0: i32) -> (i32, i32) {
    %c0_i32 = arith.constant 0 : i32
    %c0_i32_0 = arith.constant 0 : i32
    %c0_i32_1 = arith.constant 0 : i32
    return %c0_i32, %c0_i32_0 : i32, i32
  }
  func.func @transform_9(%arg0: i32) -> (i32, i32) {
    %c0_i32 = arith.constant 0 : i32
    %c0_i32_0 = arith.constant 0 : i32
    %c0_i32_1 = arith.constant 0 : i32
    return %c0_i32, %c0_i32_0 : i32, i32
  }
  func.func @transform_10(%arg0: i32) -> (i32, i32) {
    %c0_i32 = arith.constant 0 : i32
    %c0_i32_0 = arith.constant 0 : i32
    %c0_i32_1 = arith.constant 0 : i32
    return %c0_i32, %c0_i32_0 : i32, i32
  }
  func.func @transform_11(%arg0: i32) -> (i32, i32) {
    %c0_i32 = arith.constant 0 : i32
    %c0_i32_0 = arith.constant 0 : i32
    %c0_i32_1 = arith.constant 0 : i32
    return %c0_i32, %c0_i32_0 : i32, i32
  }
  func.func @transform_12(%arg0: i32) -> (i32, i32) {
    %c0_i32 = arith.constant 0 : i32
    %c0_i32_0 = arith.constant 0 : i32
    %c0_i32_1 = arith.constant 0 : i32
    return %c0_i32, %c0_i32_0 : i32, i32
  }
  func.func @transform_13(%arg0: i32) -> (i32, i32) {
    %c0_i32 = arith.constant 0 : i32
    %c0_i32_0 = arith.constant 0 : i32
    %c0_i32_1 = arith.constant 0 : i32
    return %c0_i32, %c0_i32_0 : i32, i32
  }
  func.func @transform_14(%arg0: i32) -> (i32, i32) {
    %c0_i32 = arith.constant 0 : i32
    %c0_i32_0 = arith.constant 0 : i32
    %c0_i32_1 = arith.constant 0 : i32
    return %c0_i32, %c0_i32_0 : i32, i32
  }
  func.func @transform_15(%arg0: i32) -> (i32, i32) {
    %c0_i32 = arith.constant 0 : i32
    %c0_i32_0 = arith.constant 0 : i32
    %c0_i32_1 = arith.constant 0 : i32
    return %c0_i32, %c0_i32_0 : i32, i32
  }
  func.func @transform_16(%arg0: i32) -> (i32, i32) {
    %c0_i32 = arith.constant 0 : i32
    %c0_i32_0 = arith.constant 0 : i32
    %c0_i32_1 = arith.constant 0 : i32
    return %c0_i32, %c0_i32_0 : i32, i32
  }
  func.func @transform_17(%arg0: i32) -> (i32, i32) {
    %c0_i32 = arith.constant 0 : i32
    %c0_i32_0 = arith.constant 0 : i32
    %c0_i32_1 = arith.constant 0 : i32
    return %c0_i32, %c0_i32_0 : i32, i32
  }
  func.func @transform_18(%arg0: i32) -> (i32, i32) {
    %c0_i32 = arith.constant 0 : i32
    %c0_i32_0 = arith.constant 0 : i32
    %c0_i32_1 = arith.constant 0 : i32
    return %c0_i32, %c0_i32_0 : i32, i32
  }
  func.func @transform_19(%arg0: i32) -> (i32, i32) {
    %c0_i32 = arith.constant 0 : i32
    %c0_i32_0 = arith.constant 0 : i32
    %c0_i32_1 = arith.constant 0 : i32
    return %c0_i32, %c0_i32_0 : i32, i32
  }
  func.func @transform_20(%arg0: i32) -> (i32, i32) {
    %c0_i32 = arith.constant 0 : i32
    %c0_i32_0 = arith.constant 0 : i32
    %c0_i32_1 = arith.constant 0 : i32
    return %c0_i32, %c0_i32_0 : i32, i32
  }
  func.func @transform_21(%arg0: i32) -> (i32, i32) {
    %c0_i32 = arith.constant 0 : i32
    %c0_i32_0 = arith.constant 0 : i32
    %c0_i32_1 = arith.constant 0 : i32
    return %c0_i32, %c0_i32_0 : i32, i32
  }
  func.func @transform_22(%arg0: i32) -> (i32, i32) {
    %c0_i32 = arith.constant 0 : i32
    %c0_i32_0 = arith.constant 0 : i32
    %c0_i32_1 = arith.constant 0 : i32
    return %c0_i32, %c0_i32_0 : i32, i32
  }
  func.func @transform_23(%arg0: i32) -> (i32, i32) {
    %c0_i32 = arith.constant 0 : i32
    %c0_i32_0 = arith.constant 0 : i32
    %c0_i32_1 = arith.constant 0 : i32
    return %c0_i32, %c0_i32_0 : i32, i32
  }
  func.func @transform_24(%arg0: i32) -> (i32, i32) {
    %c0_i32 = arith.constant 0 : i32
    %c0_i32_0 = arith.constant 0 : i32
    %c0_i32_1 = arith.constant 0 : i32
    return %c0_i32, %c0_i32_0 : i32, i32
  }
  func.func @transform_25(%arg0: i32) -> (i32, i32, i32) {
    %c0_i32 = arith.constant 0 : i32
    %c0_i32_0 = arith.constant 0 : i32
    %c0_i32_1 = arith.constant 0 : i32
    return %arg0, %c0_i32, %c0_i32_0 : i32, i32, i32
  }
}

</mosaic_0001>

<bundles_post_ra>
// kernel: tpu_custom_call.1
= control target key start
LH: loop header
LB: loop body
LE: loop exit
PB: predicated region body
PF: predicated region fallthrough
CT: control target
= control target key end

     0   :  { %s6787_s0 = inlined_call_operand.hbm [shape: bf16[4,8,128], index: 0, kind: input, shape index: {}]   ;;  %s6788_s1 = inlined_call_operand.hbm [shape: bf16[4,16,128], index: 1, kind: input, shape index: {}]   ;;  %s6789_s2 = inlined_call_operand.vmem [shape: bf16[4,1,128], index: 2, kind: input, shape index: {}]   ;;  %s6790_s3 = inlined_call_operand.vmem [shape: bf16[4,24,16], index: 3, kind: input, shape index: {}]   ;;  %s6791_s4 = inlined_call_operand.vmem [shape: bf16[4,1,128], index: 4, kind: input, shape index: {}]   ;;  %s6792_s5 = inlined_call_operand.hbm [shape: bf16[128,256], index: 5, kind: input, shape index: {}]   ;;  %s6793_s6 = inlined_call_operand.hbm [shape: f32[1,256], index: 6, kind: input, shape index: {}]   ;;  %s6794_s7 = inlined_call_operand.hbm [shape: bf16[640,256], index: 7, kind: input, shape index: {}]   ;;  %s6795_s8 = inlined_call_operand.hbm [shape: f32[1,256], index: 8, kind: input, shape index: {}]   ;;  %s6796_s9 = inlined_call_operand.hbm [shape: bf16[640,256], index: 9, kind: input, shape index: {}]   ;;  %s6797_s10 = inlined_call_operand.hbm [shape: f32[1,256], index: 10, kind: input, shape index: {}]   ;;  %s6798_s11 = inlined_call_operand.hbm [shape: bf16[256,128], index: 11, kind: input, shape index: {}]   ;;  %s6799_s12 = inlined_call_operand.hbm [shape: f32[1,128], index: 12, kind: input, shape index: {}]   ;;  %s6800_s13 = inlined_call_operand.hbm [shape: bf16[512,128], index: 13, kind: input, shape index: {}]   ;;  %s6801_s14 = inlined_call_operand.hbm [shape: f32[1,128], index: 14, kind: input, shape index: {}]   ;;  %s6802_s15 = inlined_call_operand.hbm [shape: bf16[512,128], index: 15, kind: input, shape index: {}]   ;;  %s6803_s16 = inlined_call_operand.hbm [shape: f32[1,128], index: 16, kind: input, shape index: {}]   ;;  %s6804_s17 = inlined_call_operand.vmem [shape: bf16[128,128], index: 17, kind: input, shape index: {}]   ;;  %s6805_s18 = inlined_call_operand.hbm [shape: f32[1,128], index: 18, kind: input, shape index: {}]   ;;  %s6806_s19 = inlined_call_operand.hbm [shape: bf16[256,128], index: 19, kind: input, shape index: {}]   ;;  %s6807_s20 = inlined_call_operand.hbm [shape: f32[1,128], index: 20, kind: input, shape index: {}]   ;;  %s6808_s21 = inlined_call_operand.vmem [shape: bf16[128,128], index: 21, kind: input, shape index: {}]   ;;  %s6809_s22 = inlined_call_operand.vmem [shape: f32[1,128], index: 22, kind: input, shape index: {}]   ;;  %s6810_s23 = inlined_call_operand.hbm [shape: bf16[128,128], index: 23, kind: input, shape index: {}]   ;;  %s6811_s24 = inlined_call_operand.vmem [shape: f32[1,128], index: 24, kind: input, shape index: {}]   ;;  %s6812_s25 = inlined_call_operand.hbm [shape: f32[4,1,128], index: 25, kind: output, shape index: {}]  }
   0x1   :  { %6827 = sst [smem:[#allocation44_spill]] %s6787_s0 }
   0x2   :  { %6828 = sst [smem:[#allocation45_spill]] %s6788_s1 }
   0x3   :  { %6829 = sst [smem:[#allocation46_spill]] %s6789_s2 }
   0x4   :  { %6830 = sst [smem:[#allocation47_spill]] %s6790_s3 }
   0x5   :  { %6831 = sst [smem:[#allocation48_spill]] %s6791_s4 }
   0x6   :  { %6832 = sst [smem:[#allocation49_spill]] %s6792_s5 }
   0x7   :  { %6833 = sst [smem:[#allocation50_spill]] %s6793_s6 }
   0x8   :  { %6834 = sst [smem:[#allocation51_spill]] %s6794_s7 }
   0x9   :  { %6835 = sst [smem:[#allocation52_spill]] %s6795_s8 }
   0xa   :  { %6836 = sst [smem:[#allocation53_spill]] %s6796_s9 }
   0xb   :  { %6837 = sst [smem:[#allocation54_spill]] %s6797_s10 }
   0xc   :  { %6838 = sst [smem:[#allocation55_spill]] %s6798_s11 }
   0xd   :  { %6839 = sst [smem:[#allocation56_spill]] %s6799_s12 }
   0xe   :  { %6840 = sst [smem:[#allocation57_spill]] %s6800_s13 }
   0xf   :  { %6841 = sst [smem:[#allocation58_spill]] %s6801_s14 }
  0x10   :  { %6842 = sst [smem:[#allocation59_spill]] %s6802_s15 }
  0x11   :  { %6843 = sst [smem:[#allocation60_spill]] %s6803_s16 }
  0x12   :  { %6844 = sst [smem:[#allocation61_spill]] %s6804_s17 }
  0x13   :  { %6845 = sst [smem:[#allocation62_spill]] %s6805_s18 }
  0x14   :  { %6846 = sst [smem:[#allocation63_spill]] %s6806_s19 }
  0x15   :  { %6847 = sst [smem:[#allocation64_spill]] %s6808_s21 }
  0x16   :  { %6848 = sst [smem:[#allocation65_spill]] %s6809_s22 }
  0x17   :  { %6849 = sst [smem:[#allocation66_spill]] %s6811_s24 }
  0x18   :  { %6850 = sst [smem:[#allocation67_spill]] %s6812_s25 }
  0x19   :  { %30 = vsyncpa [#allocation3], 0 }
  0x1a   :  { %32 = vsyncpa [#allocation3 + $0x1], 0 }
  0x1b   :  { %33 = vsyncpa [#allocation6], 0 }
  0x1c   :  { %35 = vsyncpa [#allocation6 + $0x1], 0 }
  0x1d   :  { %36 = vsyncpa [#allocation9], 0 }
  0x1e   :  { %37 = vsyncpa [#allocation12], 0 }
  0x1f   :  { %38 = vsyncpa [#allocation15], 0 }
  0x20   :  { %39 = vsyncpa [#allocation18], 0 }
  0x21   :  { %40 = vsyncpa [#allocation21], 0 }
  0x22   :  { %41 = vsyncpa [#allocation24], 0 }
  0x23   :  { %42 = vsyncpa [#allocation27], 0 }
  0x24   :  { %43 = vsyncpa [#allocation30], 0 }
  0x25   :  { %44 = vsyncpa [#allocation4], 0 }
  0x26   :  { %46 = vsyncpa [#allocation4 + $0x1], 0  ;;  %s6211_s29 = smov 0   ;;  %s6213_s2 = smov 0  }
  0x27   :  { %s6215_s6 = smov 0   ;;  %s6217_s30 = smov 0  }
  0x28 LB: > { %s6055_s7 = smov [#allocation7]   ;;  %s6232_s26 = sadd.s32 4294967295, %s6053_s30   ;;  %s6053_s30 = sphi %s6217_s30, %s6912_s30   ;;  %s6049_s6 = sphi %s6215_s6, %s6911_s6   ;;  %s6045_s2 = sphi %s6213_s2, %s6910_s2   ;;  %s6041_s29 = sphi %s6211_s29, %s6909_s29  }
  0x29   : > { %s645_s3 = sshll.u32 %s6055_s7, 4  ;;  %p4284_p0 = scmp.ge.s32.totalorder %s6053_s30, 1  ;;  %s646_s3 = int_to_ptr.vmem [resolvable:$true] %s645_s3 }
  0x2a   : > { %p6819_p1 = scmp.eq.s32.totalorder %s6232_s26, 0  ;;  %p633_p2 = scmp.lt.s32.totalorder %s6053_s30, 5 }
  0x2b   : > { %s6056_s8 = smov [#allocation8]   ;;  %s6057_s28 = smov [#allocation11]  }
  0x2c   : > { %p6237_p3 = pnand %p4284_p0, %p633_p2  ;;  %s659_s27 = sshll.u32 %s6056_s8, 4  ;;  %s660_s27 = int_to_ptr.vmem [resolvable:$true] %s659_s27 }
  0x2d   : > { %s683_s9 = sshll.u32 %s6057_s28, 4  ;;  %s5488_s0 = scalar_lea.vmem %s646_s3, 2048  ;;  %s6249_s9 = int_to_ptr.vmem [resolvable:$true] %s683_s9 }
  0x2e   : > { %p4938_p4 = pneg %p6237_p3  ;;  %p5489_p7 = scmp.ne.s32.totalorder %s646_s3, %s5488_s0 }
  0x2f   : > { %p5496_p10 = scmp.lt.s32.totalorder %s646_s3, %s646_s3  ;;  %p5497_p11 = scmp.lt.s32.totalorder %s5488_s0, %s5488_s0 }
  0x30   : > { %p6245_p5 = pnand %p4938_p4, %p6819_p1 }
  0x31   : > { %p5498_p12 = por %p5497_p11, %p5496_p10 }
  0x32   : > { %p6253_p6 = pneg %p6245_p5 }
  0x34   : > { %p5491_p8 = pnand %p5489_p7, %p6253_p6 }
  0x36   : > { %p5492_p9 = pneg %p5491_p8 }
  0x38   : > { %p5499_p13 = pnand %p5498_p12, %p5492_p9 }
  0x3a   : > { %5502 = shalt.err (!%p5499_p13)
}
  0x3b   : > { %s6058_s7 = smov 128   ;;  %s6059_s8 = smov 8  }
  0x3c   : > { %s6854_s24 = sld [smem:[#allocation49_spill]]  ;;  %s5514_s22 = scalar_lea.vmem %s660_s27, 32 }
  0x3d   : > { %p5515_p0 = scmp.ne.s32.totalorder %s660_s27, %s5514_s22  ;;  %p5522_p7 = scmp.lt.s32.totalorder %s660_s27, %s660_s27 }
  0x3e   : > { %p5523_p8 = scmp.lt.s32.totalorder %s5514_s22, %s5514_s22 }
  0x3f   : > { %p5517_p2 = pnand %p5515_p0, %p6253_p6 }
  0x40   : > { %p5524_p9 = por %p5523_p8, %p5522_p7 }
  0x41   : > { %p5518_p4 = pneg %p5517_p2 }
  0x42   : > { %4941 = dma.hbm_to_vmem [thread:$0]  (!%p6245_p5), %s6854_s24, 2048, %s646_s3, [#allocation6], %s6058_s7, %s6058_s7, %s6059_s8  }
  0x43   : > { %p5525_p10 = pnand %p5524_p9, %p5518_p4 }
  0x45   : > { %5528 = shalt.err (!%p5525_p10)
}
  0x46   : > { %s6855_s17 = sld [smem:[#allocation50_spill]]  ;;  %s5540_s24 = scalar_lea.vmem %s6249_s9, 32 }
  0x47   : > { %p5541_p11 = scmp.ne.s32.totalorder %s6249_s9, %s5540_s24  ;;  %p5548_p0 = scmp.lt.s32.totalorder %s6249_s9, %s6249_s9 }
  0x48   : > { %p5549_p2 = scmp.lt.s32.totalorder %s5540_s24, %s5540_s24 }
  0x49   : > { %p5543_p12 = pnand %p5541_p11, %p6253_p6 }
  0x4a   : > { %p5550_p4 = por %p5549_p2, %p5548_p0 }
  0x4b   : > { %p5544_p13 = pneg %p5543_p12 }
  0x4c   : > { %4944 = dma.hbm_to_vmem [thread:$0]  (!%p6245_p5), %s6855_s17, 32, %s660_s27, [#allocation9]  }
  0x4d   : > { %p5551_p7 = pnand %p5550_p4, %p5544_p13 }
  0x4f   : > { %5554 = shalt.err (!%p5551_p7)
}
  0x50   : > { %s6856_s25 = sld [smem:[#allocation52_spill]]  ;;  %s6060_s17 = smov [#allocation14]  }
  0x51   : > { %s707_s3 = sshll.u32 %s6060_s17, 4  ;;  %s6061_s27 = smov [#allocation17]   ;;  %s708_s3 = int_to_ptr.vmem [resolvable:$true] %s707_s3 }
  0x52   : > { %s731_s28 = sshll.u32 %s6061_s27, 4  ;;  %s5566_s0 = scalar_lea.vmem %s708_s3, 32  ;;  %s732_s28 = int_to_ptr.vmem [resolvable:$true] %s731_s28 }
  0x53   : > { %p5567_p8 = scmp.ne.s32.totalorder %s708_s3, %s5566_s0  ;;  %p5574_p11 = scmp.lt.s32.totalorder %s708_s3, %s708_s3 }
  0x54   : > { %p5575_p12 = scmp.lt.s32.totalorder %s5566_s0, %s5566_s0 }
  0x55   : > { %p5569_p9 = pnand %p5567_p8, %p6253_p6 }
  0x56   : > { %4950 = dma.hbm_to_vmem [thread:$0]  (!%p6245_p5), %s6856_s25, 32, %s6249_s9, [#allocation12]  }
  0x57   : > { %p5570_p10 = pneg %p5569_p9  ;;  %p5576_p13 = por %p5575_p12, %p5574_p11 }
  0x59   : > { %p5577_p0 = pnand %p5576_p13, %p5570_p10 }
  0x5b   : > { %5580 = shalt.err (!%p5577_p0)
}
  0x5c   : > { %s6857_s10 = sld [smem:[#allocation54_spill]]  ;;  %s5592_s9 = scalar_lea.vmem %s732_s28, 16 }
  0x5d   : > { %p5593_p2 = scmp.ne.s32.totalorder %s732_s28, %s5592_s9  ;;  %s5599_s22 = scalar_lea.vmem %s732_s28, 32 }
  0x5e   : > { %p5600_p8 = scmp.lt.s32.totalorder %s732_s28, %s732_s28  ;;  %p5601_p9 = scmp.lt.s32.totalorder %s5599_s22, %s5592_s9 }
  0x5f   : > { %p5595_p4 = pnand %p5593_p2, %p6253_p6 }
  0x60   : > { %p5602_p1 = por %p5601_p9, %p5600_p8 }
  0x61   : > { %p5596_p7 = pneg %p5595_p4 }
  0x62   : > { %4956 = dma.hbm_to_vmem [thread:$0]  (!%p6245_p5), %s6857_s10, 32, %s708_s3, [#allocation15]  }
  0x63   : > { %p5603_p11 = pnand %p5602_p1, %p5596_p7 }
  0x65   : > { %5606 = shalt.err (!%p5603_p11)
}
  0x66   : > { %s6858_s12 = sld [smem:[#allocation56_spill]]  ;;  %s6062_s3 = smov [#allocation20]  }
  0x67   : > { %s755_s27 = sshll.u32 %s6062_s3, 4  ;;  %s6063_s0 = smov [#allocation23]   ;;  %s756_s27 = int_to_ptr.vmem [resolvable:$true] %s755_s27 }
  0x68   : > { %s779_s24 = sshll.u32 %s6063_s0, 4  ;;  %s5618_s21 = scalar_lea.vmem %s756_s27, 16  ;;  %s780_s24 = int_to_ptr.vmem [resolvable:$true] %s779_s24 }
  0x69   : > { %p5619_p10 = scmp.ne.s32.totalorder %s756_s27, %s5618_s21  ;;  %s5625_s9 = scalar_lea.vmem %s756_s27, 32 }
  0x6a   : > { %p5626_p1 = scmp.lt.s32.totalorder %s756_s27, %s756_s27  ;;  %p5627_p0 = scmp.lt.s32.totalorder %s5625_s9, %s5618_s21 }
  0x6b   : > { %p5621_p12 = pnand %p5619_p10, %p6253_p6 }
  0x6c   : > { %4962 = dma.hbm_to_vmem [thread:$0]  (!%p6245_p5), %s6858_s12, 16, %s732_s28, [#allocation18]  }
  0x6d   : > { %p5622_p13 = pneg %p5621_p12  ;;  %p5628_p2 = por %p5627_p0, %p5626_p1 }
  0x6f   : > { %p5629_p4 = pnand %p5628_p2, %p5622_p13 }
  0x71   : > { %5632 = shalt.err (!%p5629_p4)
}
  0x72   : > { %s6859_s14 = sld [smem:[#allocation58_spill]]  ;;  %s5644_s25 = scalar_lea.vmem %s780_s24, 16 }
  0x73   : > { %p5645_p7 = scmp.ne.s32.totalorder %s780_s24, %s5644_s25  ;;  %s5651_s17 = scalar_lea.vmem %s780_s24, 32 }
  0x74   : > { %p5652_p11 = scmp.lt.s32.totalorder %s780_s24, %s780_s24  ;;  %p5653_p10 = scmp.lt.s32.totalorder %s5651_s17, %s5644_s25 }
  0x75   : > { %p5647_p8 = pnand %p5645_p7, %p6253_p6 }
  0x76   : > { %p5654_p12 = por %p5653_p10, %p5652_p11 }
  0x77   : > { %p5648_p9 = pneg %p5647_p8 }
  0x78   : > { %4968 = dma.hbm_to_vmem [thread:$0]  (!%p6245_p5), %s6859_s14, 16, %s756_s27, [#allocation21]  }
  0x79   : > { %p5655_p1 = pnand %p5654_p12, %p5648_p9 }
  0x7b   : > { %5658 = shalt.err (!%p5655_p1)
}
  0x7c   : > { %s6860_s16 = sld [smem:[#allocation60_spill]]  ;;  %s6064_s27 = smov [#allocation26]  }
  0x7d   : > { %s803_s21 = sshll.u32 %s6064_s27, 4  ;;  %s6065_s9 = smov [#allocation10]   ;;  %s804_s21 = int_to_ptr.vmem [resolvable:$true] %s803_s21 }
  0x7e   : > { %s669_s22 = sshll.u32 %s6065_s9, 4  ;;  %s5670_s28 = scalar_lea.vmem %s804_s21, 2048  ;;  %s670_s22 = int_to_ptr.vmem [resolvable:$true] %s669_s22 }
  0x7f   : > { %p5671_p13 = scmp.ne.s32.totalorder %s804_s21, %s5670_s28  ;;  %p5678_p4 = scmp.lt.s32.totalorder %s804_s21, %s804_s21 }
  0x80   : > { %p5679_p7 = scmp.lt.s32.totalorder %s5670_s28, %s5670_s28 }
  0x81   : > { %p5673_p0 = pnand %p5671_p13, %p6253_p6 }
  0x82   : > { %4974 = dma.hbm_to_vmem [thread:$0]  (!%p6245_p5), %s6860_s16, 16, %s780_s24, [#allocation24]  }
  0x83   : > { %p5674_p2 = pneg %p5673_p0  ;;  %p5680_p8 = por %p5679_p7, %p5678_p4 }
  0x85   : > { %p5681_p9 = pnand %p5680_p8, %p5674_p2 }
  0x87   : > { %5684 = shalt.err (!%p5681_p9)
}
  0x88   : > { %s6820_s25 = smov 64   ;;  %s6822_s17 = smov 4  }
  0x89   : > { %s6861_s19 = sld [smem:[#allocation63_spill]]  ;;  %s5696_s0 = scalar_lea.vmem %s670_s22, 10240 }
  0x8a   : > { %p5697_p11 = scmp.ne.s32.totalorder %s670_s22, %s5696_s0  ;;  %p5704_p1 = scmp.lt.s32.totalorder %s670_s22, %s670_s22 }
  0x8b   : > { %p5705_p13 = scmp.lt.s32.totalorder %s5696_s0, %s5696_s0 }
  0x8c   : > { %p5699_p10 = pnand %p5697_p11, %p6253_p6 }
  0x8d   : > { %p5706_p0 = por %p5705_p13, %p5704_p1 }
  0x8e   : > { %p5700_p12 = pneg %p5699_p10 }
  0x8f   : > { %4980 = dma.hbm_to_vmem [thread:$0]  (!%p6245_p5), %s6861_s19, 2048, %s804_s21, [#allocation27], %s6820_s25, %s6820_s25, %s6822_s17  }
  0x90   : > { %p5707_p2 = pnand %p5706_p0, %p5700_p12 }
  0x92   : > { %5710 = shalt.err (!%p5707_p2)
}
  0x93   : > { %s6862_s28 = sld [smem:[#allocation51_spill]]  ;;  %s6068_s21 = smov [#allocation13]  }
  0x94   : > { %s693_s24 = sshll.u32 %s6068_s21, 4  ;;  %s6069_s3 = smov [#allocation16]   ;;  %s694_s24 = int_to_ptr.vmem [resolvable:$true] %s693_s24 }
  0x95   : > { %s717_s25 = sshll.u32 %s6069_s3, 4  ;;  %s5722_s17 = scalar_lea.vmem %s694_s24, 10240  ;;  %s718_s25 = int_to_ptr.vmem [resolvable:$true] %s717_s25 }
  0x96   : > { %p5723_p4 = scmp.ne.s32.totalorder %s694_s24, %s5722_s17  ;;  %p5730_p9 = scmp.lt.s32.totalorder %s694_s24, %s694_s24 }
  0x97   : > { %p5731_p11 = scmp.lt.s32.totalorder %s5722_s17, %s5722_s17 }
  0x98   : > { %p5725_p7 = pnand %p5723_p4, %p6253_p6 }
  0x99   : > { %4947 = dma.hbm_to_vmem [thread:$0]  (!%p6245_p5), %s6862_s28, 10240, %s670_s22, [#allocation9], %s6058_s7, %s6058_s7, %s6059_s8  }
  0x9a   : > { %p5726_p8 = pneg %p5725_p7  ;;  %p5732_p10 = por %p5731_p11, %p5730_p9 }
  0x9c   : > { %p5733_p12 = pnand %p5732_p10, %p5726_p8 }
  0x9e   : > { %5736 = shalt.err (!%p5733_p12)
}
  0x9f   : > { %s6863_s27 = sld [smem:[#allocation53_spill]]  ;;  %s5748_s9 = scalar_lea.vmem %s718_s25, 2048 }
  0xa0   : > { %p5749_p1 = scmp.ne.s32.totalorder %s718_s25, %s5748_s9  ;;  %p5756_p2 = scmp.lt.s32.totalorder %s718_s25, %s718_s25 }
  0xa1   : > { %p5757_p4 = scmp.lt.s32.totalorder %s5748_s9, %s5748_s9 }
  0xa2   : > { %p5751_p13 = pnand %p5749_p1, %p6253_p6 }
  0xa3   : > { %p5758_p7 = por %p5757_p4, %p5756_p2 }
  0xa4   : > { %p5752_p0 = pneg %p5751_p13 }
  0xa5   : > { %4953 = dma.hbm_to_vmem [thread:$0]  (!%p6245_p5), %s6863_s27, 10240, %s694_s24, [#allocation12], %s6058_s7, %s6058_s7, %s6059_s8  }
  0xa6   : > { %p5759_p8 = pnand %p5758_p7, %p5752_p0 }
  0xa8   : > { %5762 = shalt.err (!%p5759_p8)
}
  0xa9   : > { %s6864_s17 = smov 4   ;;  %s6865_s28 = smov 64  }
  0xaa   : > { %s6866_s11 = sld [smem:[#allocation55_spill]]  ;;  %s6070_s7 = smov [#allocation19]  }
  0xab   : > { %s741_s8 = sshll.u32 %s6070_s7, 4  ;;  %s6071_s24 = smov [#allocation22]   ;;  %s742_s8 = int_to_ptr.vmem [resolvable:$true] %s741_s8 }
  0xac   : > { %s765_s22 = sshll.u32 %s6071_s24, 4  ;;  %s5774_s0 = scalar_lea.vmem %s742_s8, 4096  ;;  %s766_s22 = int_to_ptr.vmem [resolvable:$true] %s765_s22 }
  0xad   : > { %p5775_p9 = scmp.ne.s32.totalorder %s742_s8, %s5774_s0  ;;  %p5782_p12 = scmp.lt.s32.totalorder %s742_s8, %s742_s8 }
  0xae   : > { %p5783_p1 = scmp.lt.s32.totalorder %s5774_s0, %s5774_s0 }
  0xaf   : > { %p5777_p11 = pnand %p5775_p9, %p6253_p6 }
  0xb0   : > { %4959 = dma.hbm_to_vmem [thread:$0]  (!%p6245_p5), %s6866_s11, 2048, %s718_s25, [#allocation15], %s6865_s28, %s6865_s28, %s6864_s17  }
  0xb1   : > { %p5778_p10 = pneg %p5777_p11  ;;  %p5784_p13 = por %p5783_p1, %p5782_p12 }
  0xb3   : > { %p5785_p0 = pnand %p5784_p13, %p5778_p10 }
  0xb5   : > { %5788 = shalt.err (!%p5785_p0)
}
  0xb6   : > { %s6867_s13 = sld [smem:[#allocation57_spill]]  ;;  %s5800_s9 = scalar_lea.vmem %s766_s22, 4096 }
  0xb7   : > { %p5801_p2 = scmp.ne.s32.totalorder %s766_s22, %s5800_s9  ;;  %p5808_p8 = scmp.lt.s32.totalorder %s766_s22, %s766_s22 }
  0xb8   : > { %p5809_p9 = scmp.lt.s32.totalorder %s5800_s9, %s5800_s9 }
  0xb9   : > { %p5803_p4 = pnand %p5801_p2, %p6253_p6 }
  0xba   : > { %p5810_p11 = por %p5809_p9, %p5808_p8 }
  0xbb   : > { %p5804_p7 = pneg %p5803_p4 }
  0xbc   : > { %4965 = dma.hbm_to_vmem [thread:$0]  (!%p6245_p5), %s6867_s13, 4096, %s742_s8, [#allocation18], %s6865_s28, %s6865_s28, %s6864_s17  }
  0xbd   : > { %p5811_p10 = pnand %p5810_p11, %p5804_p7 }
  0xbf   : > { %5814 = shalt.err (!%p5811_p10)
}
  0xc0   : > { %s6868_s15 = sld [smem:[#allocation59_spill]]  ;;  %s6072_s7 = smov [#allocation25]  }
  0xc1   : > { %s793_s8 = sshll.u32 %s6072_s7, 4  ;;  %s6073_s24 = smov [#allocation28]   ;;  %s794_s8 = int_to_ptr.vmem [resolvable:$true] %s793_s8 }
  0xc2   : > { %s817_s0 = sshll.u32 %s6073_s24, 4  ;;  %s5826_s25 = scalar_lea.vmem %s794_s8, 16  ;;  %s818_s0 = int_to_ptr.vmem [resolvable:$true] %s817_s0 }
  0xc3   : > { %p5827_p12 = scmp.ne.s32.totalorder %s794_s8, %s5826_s25  ;;  %s5833_s27 = scalar_lea.vmem %s794_s8, 32 }
  0xc4   : > { %p5834_p0 = scmp.lt.s32.totalorder %s794_s8, %s794_s8  ;;  %p5835_p2 = scmp.lt.s32.totalorder %s5833_s27, %s5826_s25 }
  0xc5   : > { %p5829_p1 = pnand %p5827_p12, %p6253_p6 }
  0xc6   : > { %4971 = dma.hbm_to_vmem [thread:$0]  (!%p6245_p5), %s6868_s15, 4096, %s766_s22, [#allocation21], %s6865_s28, %s6865_s28, %s6864_s17  }
  0xc7   : > { %p5830_p13 = pneg %p5829_p1  ;;  %p5836_p4 = por %p5835_p2, %p5834_p0 }
  0xc9   : > { %p5837_p7 = pnand %p5836_p4, %p5830_p13 }
  0xcb   : > { %5840 = shalt.err (!%p5837_p7)
}
  0xcc   : > { %s6869_s18 = sld [smem:[#allocation62_spill]]  ;;  %s5852_s21 = scalar_lea.vmem %s818_s0, 16 }
  0xcd   : > { %p5853_p8 = scmp.ne.s32.totalorder %s818_s0, %s5852_s21  ;;  %s5859_s3 = scalar_lea.vmem %s818_s0, 32 }
  0xce   : > { %p5860_p10 = scmp.lt.s32.totalorder %s818_s0, %s818_s0  ;;  %p5861_p12 = scmp.lt.s32.totalorder %s5859_s3, %s5852_s21 }
  0xcf   : > { %p5855_p9 = pnand %p5853_p8, %p6253_p6 }
  0xd0   : > { %p5862_p1 = por %p5861_p12, %p5860_p10 }
  0xd1   : > { %p5856_p11 = pneg %p5855_p9 }
  0xd2   : > { %4977 = dma.hbm_to_vmem [thread:$0]  (!%p6245_p5), %s6869_s18, 16, %s794_s8, [#allocation24]  }
  0xd3   : > { %p5863_p0 = pnand %p5862_p1, %p5856_p11 }
  0xd5   : > { %5866 = shalt.err (!%p5863_p0)
}
  0xd6   : > { %4983 = dma.hbm_to_vmem [thread:$0]  (!%p6245_p5), %s6807_s20, 16, %s818_s0, [#allocation27]  }
  0xd7   : > { %s6074_s8 = smov [#allocation29]  }
  0xd8   : > { %s833_s25 = sshll.u32 %s6074_s8, 4  ;;  %s834_s25 = int_to_ptr.vmem [resolvable:$true] %s833_s25 }
  0xd9   : > { %s5878_s27 = scalar_lea.vmem %s834_s25, 1024  ;;  %p5886_p7 = scmp.lt.s32.totalorder %s834_s25, %s834_s25 }
  0xda   : > { %p5879_p13 = scmp.ne.s32.totalorder %s834_s25, %s5878_s27  ;;  %p5887_p8 = scmp.lt.s32.totalorder %s5878_s27, %s5878_s27 }
  0xdc   : > { %p5881_p2 = pnand %p5879_p13, %p6253_p6  ;;  %p5888_p9 = por %p5887_p8, %p5886_p7 }
  0xde   : > { %p5882_p4 = pneg %p5881_p2 }
  0xe0   : > { %p5889_p11 = pnand %p5888_p9, %p5882_p4 }
  0xe2   : > { %5892 = shalt.err (!%p5889_p11)
}
  0xe3   : > { %4986 = dma.hbm_to_vmem [thread:$0]  (!%p6245_p5), %s6810_s23, 1024, %s834_s25, [#allocation30], %s6865_s28, %s6865_s28, %s6864_s17  }
  0xe4   : > { %s4283_s4 = sadd.s32 4294967294, %s6053_s30   ;;  %s6400_s5 = sadd.s32 1, %s6053_s30  }
  0xe5   : > { %s56_s22 = ssub.s32 %s6053_s30, %s6400_s5  ;;  %s59_s21 = sadd.s32 1, %s6049_s6 }
  0xe6   : > { %p57_p6 = scmp.eq.s32.totalorder %s56_s22, 0  ;;  %p66_p10 = scmp.ne.s32.totalorder %s6049_s6, %s6045_s2 }
  0xe7   : > { %p67_p12 = scmp.eq.s32.totalorder %s6053_s30, 0  ;;  %p72_p1 = scmp.ne.s32.totalorder %s6045_s2, %s6041_s29 }
  0xe8   : > { %s6411_s3 = scalar_select %p57_p6, %s6049_s6, %s59_s21  }
  0xe9   : > { %p6413_p0 = por %p67_p12, %p66_p10  ;;  %p6871_p13 = scmp.eq.s32.totalorder %s6232_s26, 0 }
  0xea   : > { %p620_p2 = scmp.eq.s32.totalorder %s6232_s26, 3  ;;  %p626_p4 = scmp.eq.s32.totalorder %s4283_s4, 3 }
  0xeb   : > { %p6419_p5 = por %p6871_p13, %p72_p1  ;;  %p5014_p7 = scmp.lt.s32.totalorder %s6053_s30, 4 }
  0xec   : > { %s6426_s8 = sand.u32 1, %s6049_s6   ;;  %p6428_p8 = por %p620_p2, %p66_p10 }
  0xed   : > { %s6872_s24 = scalar_select %p6419_p5, 1, 0 }
  0xee   : > { %s6873_s25 = scalar_select %p6428_p8, 1, 0 }
  0xef   : > { %p6432_p9 = por %p626_p4, %p72_p1  ;;  %s4302_s9 = sshll.u32 %s6426_s8, 2 }
  0xf0   : > { %s4303_s0 = sshll.u32 %s6053_s30, 6  ;;  %s6875_s10 = sld [smem:[#allocation44_spill]] }
  0xf1   : > { %s6874_s27 = scalar_select %p6432_p9, 1, 0 }
  0xf2   : > { %s854_s11 = scalar_lea.vmem [#allocation2], %s4302_s9  ;;  %p6447_p11 = pnand %p5014_p7, %p6413_p0 }
  0xf3   : > { %s861_s12 = sshll.u32 %s854_s11, 4  ;;  %s851_s16 = scalar_lea.sflag [#allocation3], %s6426_s8  ;;  %s6443_s12 = int_to_ptr.vmem [resolvable:$true] %s861_s12 }
  0xf4   : > { %p5895_p10 = pneg %p6447_p11 }
  0xf6   : > { %s6441_s4 = scalar_lea.hbm %s6875_s10, %s4303_s0  ;;  %s5898_s7 = scalar_lea.hbm %s6875_s10, 256 }
  0xf7   : > { %s5893_s22 = scalar_lea.hbm %s6441_s4, 64  ;;  %p5899_p0 = scmp.lt.s32.totalorder %s6441_s4, %s6875_s10 }
  0xf8   : > { %p5894_p6 = scmp.ne.s32.totalorder %s6441_s4, %s5893_s22  ;;  %p5900_p13 = scmp.lt.s32.totalorder %s5898_s7, %s5893_s22 }
  0xfa   : > { %p5896_p12 = pnand %p5895_p10, %p5894_p6  ;;  %p5901_p2 = por %p5900_p13, %p5899_p0 }
  0xfc   : > { %p5897_p1 = pneg %p5896_p12 }
  0xfe   : > { %p5902_p4 = pnand %p5901_p2, %p5897_p1 }
 0x100   : > { %5905 = shalt.err (!%p5902_p4)
}
 0x101   : > { %s5906_s15 = scalar_lea.vmem %s6443_s12, 64  ;;  %s6075_s11 = smov [#allocation2]  }
 0x102   : > { %p5907_p7 = scmp.ne.s32.totalorder %s6443_s12, %s5906_s15  ;;  %s5911_s9 = sshll.u32 %s6075_s11, 4  ;;  %s5912_s9 = int_to_ptr.vmem [resolvable:$false] %s5911_s9 }
 0x103   : > { %s5913_s14 = scalar_lea.vmem %s5912_s9, 128  ;;  %p5914_p9 = scmp.lt.s32.totalorder %s6443_s12, %s5912_s9 }
 0x104   : > { %p5909_p6 = pnand %p5907_p7, %p5895_p10  ;;  %p5915_p8 = scmp.lt.s32.totalorder %s5913_s14, %s5906_s15 }
 0x106   : > { %p5910_p12 = pneg %p5909_p6  ;;  %p5916_p5 = por %p5915_p8, %p5914_p9 }
 0x108   : > { %p5917_p0 = pnand %p5916_p5, %p5910_p12 }
 0x10a   : > { %5920 = shalt.err (!%p5917_p0)
}
 0x10b   : > { %4990 = dma.hbm_to_vmem [thread:$0]  (!%p6447_p11), %s6441_s4, 64, %s6443_s12, %s851_s16  }
 0x10c   : > { %s6877_s22 = sshll.u32 %s6426_s8, 3  ;;  %s4638_s21 = sshll.u32 %s6053_s30, 7 }
 0x10d   : > { %s872_s7 = scalar_lea.vmem [#allocation5], %s6877_s22  ;;  %s6878_s15 = sld [smem:[#allocation45_spill]] }
 0x10e   : > { %s879_s0 = sshll.u32 %s872_s7, 4  ;;  %s6879_s10 = sand.u32 1, %s6053_s30   ;;  %s6480_s0 = int_to_ptr.vmem [resolvable:$true] %s879_s0 }
 0x10f   : > { %s869_s18 = scalar_lea.sflag [#allocation6], %s6879_s10 }
 0x113   : > { %s6486_s9 = scalar_lea.hbm %s6878_s15, %s4638_s21  ;;  %s5926_s8 = scalar_lea.hbm %s6878_s15, 512 }
 0x114   : > { %s5921_s19 = scalar_lea.hbm %s6486_s9, 128  ;;  %p5927_p1 = scmp.lt.s32.totalorder %s6486_s9, %s6878_s15 }
 0x115   : > { %p5922_p5 = scmp.ne.s32.totalorder %s6486_s9, %s5921_s19  ;;  %p5928_p13 = scmp.lt.s32.totalorder %s5926_s8, %s5921_s19 }
 0x117   : > { %p5924_p8 = pnand %p5922_p5, %p5895_p10  ;;  %p5929_p2 = por %p5928_p13, %p5927_p1 }
 0x119   : > { %p5925_p9 = pneg %p5924_p8 }
 0x11b   : > { %p5930_p4 = pnand %p5929_p2, %p5925_p9 }
 0x11d   : > { %5933 = shalt.err (!%p5930_p4)
}
 0x11e   : > { %s5934_s10 = scalar_lea.vmem %s6480_s0, 128  ;;  %s6076_s7 = smov [#allocation5]  }
 0x11f   : > { %p5935_p7 = scmp.ne.s32.totalorder %s6480_s0, %s5934_s10  ;;  %s5939_s21 = sshll.u32 %s6076_s7, 4  ;;  %s5940_s21 = int_to_ptr.vmem [resolvable:$false] %s5939_s21 }
 0x120   : > { %s5941_s11 = scalar_lea.vmem %s5940_s21, 256  ;;  %p5942_p0 = scmp.lt.s32.totalorder %s6480_s0, %s5940_s21 }
 0x121   : > { %p5937_p6 = pnand %p5935_p7, %p5895_p10  ;;  %p5943_p5 = scmp.lt.s32.totalorder %s5941_s11, %s5934_s10 }
 0x123   : > { %p5938_p12 = pneg %p5937_p6  ;;  %p5944_p8 = por %p5943_p5, %p5942_p0 }
 0x125   : > { %p5945_p1 = pnand %p5944_p8, %p5938_p12 }
 0x127   : > { %5948 = shalt.err (!%p5945_p1)
}
 0x128   : > { %4993 = dma.hbm_to_vmem [thread:$0]  (!%p6447_p11), %s6486_s9, 128, %s6480_s0, %s869_s18, %s6865_s28, %s6865_s28, %s6864_s17  }
 0x129   : > { %911 = sbr.rel (%p6237_p3) target bundleno = 2693 (0xa85), region = 120  ;;  %s6518_s19 = sand.u32 (!%p6237_p3), 1, %s6045_s2  }
 0x12a   : > { %s4308_s14 = sshll.u32 (!%p6237_p3), %s6518_s19, 2  ;;  %s914_s12 = scalar_lea.sflag (!%p6237_p3), [#allocation3], %s6518_s19 }
 0x12b   : > { %s6522_s16 = scalar_lea.vmem (!%p6237_p3), [#allocation2], %s4308_s14  ;;  %p6880_p10 = scmp.ne.s32.totalorder (!%p6237_p3), %s6872_s24, 0 }
 0x12e   : > { %5992 = dma.done.wait (%p6880_p10), %s914_s12, 64  }
 0x12f   : > { %5994 = vsyncadd (%p6880_p10), %s914_s12, 4294967232  ;;  %s922_s13 = sand.u32 1, %s6232_s26   ;;  %s4309_s18 = sshll.u32 %s6518_s19, 3 }
 0x130   : > { %s923_s1 = scalar_lea.sflag [#allocation6], %s922_s13  ;;  %s6530_s17 = scalar_lea.vmem [#allocation5], %s4309_s18 }
 0x131   : > { %5996 = dma.done.wait (%p6880_p10), %s923_s1, 128  }
 0x132   : > { %5998 = vsyncadd (%p6880_p10), %s923_s1, 4294967168  ;;  %p6881_p3 = scmp.eq.s32.totalorder %s6232_s26, 0 }
 0x134   : > { %6000 = dma.done.wait (%p6881_p3), [#allocation6], 2048   ;;  %p6882_p11 = pmov %p6881_p3 }
 0x135   : > { %p6883_p9 = pmov %p6881_p3 }
 0x136   : > { %6002 = vsyncadd (%p6882_p11), [#allocation6], 4294965248 }
 0x137   : > { %6004 = dma.done.wait (%p6883_p9), [#allocation9], 10272   ;;  %p6884_p13 = pmov %p6881_p3 }
 0x138   : > { %p6885_p2 = pmov %p6881_p3 }
 0x139   : > { %6006 = vsyncadd (%p6884_p13), [#allocation9], 4294957024 }
 0x13a   : > { %6008 = dma.done.wait (%p6885_p2), [#allocation12], 10272   ;;  %p6886_p4 = pmov %p6885_p2 }
 0x13b   : > { %p6887_p7 = pmov %p6885_p2 }
 0x13c   : > { %6010 = vsyncadd (%p6886_p4), [#allocation12], 4294957024 }
 0x13d   : > { %6012 = dma.done.wait (%p6887_p7), [#allocation15], 2080   ;;  %p6888_p6 = pmov %p6885_p2 }
 0x13e   : > { %p6889_p12 = pmov %p6885_p2 }
 0x13f   : > { %6014 = vsyncadd (%p6888_p6), [#allocation15], 4294965216 }
 0x140   : > { %6016 = dma.done.wait (%p6889_p12), [#allocation18], 4112   ;;  %p6890_p0 = pmov %p6885_p2 }
 0x142   : > { %6018 = vsyncadd (%p6890_p0), [#allocation18], 4294963184  ;;  %p6891_p5 = pmov %p6890_p0 }
 0x143   : > { %p6892_p8 = pmov %p6890_p0 }
 0x144   : > { %6020 = dma.done.wait (%p6891_p5), [#allocation21], 4112  }
 0x145   : > { %6022 = vsyncadd (%p6892_p8), [#allocation21], 4294963184  ;;  %p6893_p1 = pmov %p6890_p0 }
 0x146   : > { %p6894_p10 = pmov %p6890_p0 }
 0x147   : > { %6024 = dma.done.wait (%p6893_p1), [#allocation24], 32  }
 0x148   : > { %6026 = vsyncadd (%p6894_p10), [#allocation24], 4294967264  ;;  %p6895_p3 = pmov %p6890_p0 }
 0x149   : > { %p6896_p11 = pmov %p6890_p0 }
 0x14a   : > { %6028 = dma.done.wait (%p6895_p3), [#allocation27], 2064  }
 0x14b   : > { %6030 = vsyncadd (%p6896_p11), [#allocation27], 4294965232  ;;  %p6897_p9 = pmov %p6890_p0 }
 0x14c   : > { %p6898_p13 = pmov %p6890_p0 }
 0x14d   : > { %6032 = dma.done.wait (%p6897_p9), [#allocation30], 1024  }
 0x14e   : > { %6034 = vsyncadd (%p6898_p13), [#allocation30], 4294966272  ;;  %v6077_v0 = vmov 0   ;;  %v5087_v1 = vld [vmem:[#allocation7 + $0x74] ss:$8 sps:$4 sm:$0xff]   ;;  %p1072_p2 = scmp.lt.s32.totalorder %s6232_s26, 3  ;;  %v1110_v46 = vlaneseq }
 0x14f   : > { %1238 = vmatprep.mubr.bf16.mxu0 %v6077_v0  ;;  %1302 = vmatprep.mubr.bf16.mxu1 %v6077_v0  ;;  %v5089_v2 = vld [vmem:[#allocation7 + $0x70] ss:$8 sps:$4 sm:$0xff]   ;;  %v5090_v3 = vld [vmem:[#allocation7 + $0x64] ss:$8 sps:$4 sm:$0xff]   ;;  %v5092_v4 = vld [vmem:[#allocation7 + $0x60] ss:$8 sps:$4 sm:$0xff]  }
 0x150   : > { %1206 = vmatprep.subr.bf16.mxu0 %v5087_v1  ;;  %v5093_v5 = vld [vmem:[#allocation7 + $0x54] ss:$8 sps:$4 sm:$0xff]   ;;  %v5095_v6 = vld [vmem:[#allocation7 + $0x50] ss:$8 sps:$4 sm:$0xff]   ;;  %v5096_v7 = vld [vmem:[#allocation7 + $0x44] ss:$8 sps:$4 sm:$0xff]  }
 0x151   : > { %1207 = vmatpush1.bf16.msra.mxu0 %v5089_v2  ;;  %v5098_v8 = vld [vmem:[#allocation7 + $0x40] ss:$8 sps:$4 sm:$0xff]   ;;  %v5099_v9 = vld [vmem:[#allocation7 + $0x34] ss:$8 sps:$4 sm:$0xff]   ;;  %v5101_v10 = vld [vmem:[#allocation7 + $0x30] ss:$8 sps:$4 sm:$0xff]  }
 0x152   : > { %1208 = vmatprep.subr.bf16.mxu0 %v5090_v3  ;;  %v5102_v11 = vld [vmem:[#allocation7 + $0x24] ss:$8 sps:$4 sm:$0xff]   ;;  %v5104_v12 = vld [vmem:[#allocation7 + $0x20] ss:$8 sps:$4 sm:$0xff]   ;;  %v5105_v13 = vld [vmem:[#allocation7 + $0x14] ss:$8 sps:$4 sm:$0xff]  }
 0x153   : > { %v5107_v14 = vld [vmem:[#allocation7 + $0x10] ss:$8 sps:$4 sm:$0xff]   ;;  %v5108_v15 = vld [vmem:[#allocation7 + $0x4] ss:$8 sps:$4 sm:$0xff]   ;;  %v5110_v16 = vld [vmem:[#allocation7] ss:$8 sps:$4 sm:$0xff]  }
 0x154   : > { %v5111_v17 = vld [vmem:[%s6530_s17] sm:$0xff]   ;;  %s6577_s28 = scalar_select %p1072_p2, %s6232_s26, 3  ;;  %v5125_v20 = vld [vmem:[#allocation10 + $0x160] ss:$8 sps:$4 sm:$0xff]   ;;  %v1111_v47 = vshrl.u32 %v1110_v46, 7  ;;  %vm1263_vm0 = vcmask 130048  }
 0x155   : > { %1209 = vmatpush1.bf16.msra.mxu0 %v5092_v4  ;;  %s6899_s8 = sld [smem:[#allocation47_spill]]  ;;  %v5119_v18 = vld [vmem:[#allocation10 + $0x170] ss:$8 sps:$4 sm:$0xff]   ;;  %v5121_v19 = vld [vmem:[#allocation10 + $0x174] ss:$8 sps:$4 sm:$0xff]   ;;  %vm6079_vm1 = vmmov 0  }
 0x156   : > { %1210 = vmatprep.subr.bf16.mxu0 %v5093_v5  ;;  %s4867_s24 = smul.u32 12, %s6577_s28  ;;  %v5127_v21 = vld [vmem:[#allocation10 + $0x164] ss:$8 sps:$4 sm:$0xff]   ;;  %v5131_v22 = vld [vmem:[#allocation10 + $0x150] ss:$8 sps:$4 sm:$0xff]   ;;  %v6585_v48 = vsub.s32 1, %v1111_v47 }
 0x157   : > { %v5133_v23 = vld [vmem:[#allocation10 + $0x154] ss:$8 sps:$4 sm:$0xff]   ;;  %v5137_v24 = vld [vmem:[#allocation10 + $0x140] ss:$8 sps:$4 sm:$0xff]   ;;  %v5139_v25 = vld [vmem:[#allocation10 + $0x144] ss:$8 sps:$4 sm:$0xff]  }
 0x158   : > { %v5143_v26 = vld [vmem:[#allocation10 + $0x130] ss:$8 sps:$4 sm:$0xff]   ;;  %v5145_v27 = vld [vmem:[#allocation10 + $0x134] ss:$8 sps:$4 sm:$0xff]   ;;  %v5149_v28 = vld [vmem:[#allocation10 + $0x120] ss:$8 sps:$4 sm:$0xff]  }
 0x159   : > { %1211 = vmatpush1.bf16.msra.mxu0 %v5095_v6  ;;  %v5151_v29 = vld [vmem:[#allocation10 + $0x124] ss:$8 sps:$4 sm:$0xff]   ;;  %v5155_v30 = vld [vmem:[#allocation10 + $0x110] ss:$8 sps:$4 sm:$0xff]   ;;  %v5157_v31 = vld [vmem:[#allocation10 + $0x114] ss:$8 sps:$4 sm:$0xff]  }
 0x15a   : > { %1212 = vmatprep.subr.bf16.mxu0 %v5096_v7  ;;  %v5161_v32 = vld [vmem:[#allocation10 + $0x100] ss:$8 sps:$4 sm:$0xff]   ;;  %v5163_v33 = vld [vmem:[#allocation10 + $0x104] ss:$8 sps:$4 sm:$0xff]   ;;  %v5167_v34 = vld [vmem:[#allocation10 + $0x1f0] ss:$8 sps:$4 sm:$0xff]  }
 0x15b   : > { %s6583_s4 = scalar_lea.vmem %s6899_s8, %s4867_s24  ;;  %v5169_v35 = vld [vmem:[#allocation10 + $0x1f4] ss:$8 sps:$4 sm:$0xff]   ;;  %v5173_v36 = vld [vmem:[#allocation10 + $0x1e0] ss:$8 sps:$4 sm:$0xff]   ;;  %v5175_v37 = vld [vmem:[#allocation10 + $0x1e4] ss:$8 sps:$4 sm:$0xff]  }
 0x15c   : > { %v5179_v38 = vld [vmem:[#allocation10 + $0x1d0] ss:$8 sps:$4 sm:$0xff]   ;;  %v5181_v39 = vld [vmem:[#allocation10 + $0x1d4] ss:$8 sps:$4 sm:$0xff]   ;;  %v5185_v40 = vld [vmem:[#allocation10 + $0x1c0] ss:$8 sps:$4 sm:$0xff]  }
 0x15d   : > { %1213 = vmatpush1.bf16.msra.mxu0 %v5098_v8  ;;  %v5187_v41 = vld [vmem:[#allocation10 + $0x1c4] ss:$8 sps:$4 sm:$0xff]   ;;  %v5192_v42 = vld [vmem:[#allocation10 + $0x1b0] ss:$8 sps:$4 sm:$0xff]   ;;  %v5194_v43 = vld [vmem:[#allocation10 + $0x1b4] ss:$8 sps:$4 sm:$0xff]  }
 0x15e   : > { %1214 = vmatprep.subr.bf16.mxu0 %v5099_v9  ;;  %v5198_v44 = vld [vmem:[#allocation10 + $0x1a0] ss:$8 sps:$4 sm:$0xff]   ;;  %v5200_v45 = vld [vmem:[#allocation10 + $0x1a4] ss:$8 sps:$4 sm:$0xff]   ;;  %v6587_v49 = vsub.s32 0, %v1111_v47  ;;  %s6900_s7 = sld [smem:[#allocation46_spill]] }
 0x15f   : > { %v1108_v50 = vld [vmem:[#allocation8] sm:$0x3]  ;;  %v6597_v5 = vld [vmem:[%s6583_s4] sm:$0xff]   ;;  %v5113_v6 = vld [vmem:[#allocation10 + $0x70] ss:$8 sps:$4 sm:$0xff]   ;;  %s6901_s13 = sld [smem:[#allocation61_spill]] }
 0x160   : > { %v1117_v52 = vrot.slane %v1108_v50, %v6585_v48  ;;  %v1113_v53 = vrot.slane %v1108_v50, %v6587_v49  ;;  %v5115_v3 = vld [vmem:[#allocation10 + $0x74] ss:$8 sps:$4 sm:$0xff]   ;;  %v5118_v7 = vld [vmem:[#allocation10 + $0x64] ss:$8 sps:$4 sm:$0xff]   ;;  %v5116_v8 = vld [vmem:[#allocation10 + $0x60] ss:$8 sps:$4 sm:$0xff]  }
 0x161   : > { %1215 = vmatpush1.bf16.msra.mxu0 %v5101_v10  ;;  %v5124_v9 = vld [vmem:[#allocation10 + $0x54] ss:$8 sps:$4 sm:$0xff]   ;;  %v6604_v10 = vld [vmem:[%s6583_s4 + $0x8] ss:$0 sps:$4 sm:$0xff]   ;;  %v5207_v47 = vld [vmem:[#allocation10 + $0x270] ss:$8 sps:$4 sm:$0xff]  }
 0x162   : > { %1216 = vmatprep.subr.bf16.mxu0 %v5102_v11  ;;  %v5122_v11 = vld [vmem:[#allocation10 + $0x50] ss:$8 sps:$4 sm:$0xff]   ;;  %s6902_s1 = sld [smem:[#allocation48_spill]]  ;;  %s1071_s11 = scalar_lea.vmem [#allocation31], %s6518_s19 }
 0x163   : > { %s6903_s9 = sld [smem:[#allocation64_spill]]  ;;  %s4012_s14 = sshll.u32 %s1071_s11, 4  ;;  %s6747_s14 = int_to_ptr.vmem [resolvable:$true] %s4012_s14 }
 0x164   : > { %s1074_s21 = scalar_lea.vmem %s6900_s7, %s6577_s28  ;;  %s6904_s4 = sld [smem:[#allocation65_spill]] }
 0x165   : > { %1217 = vmatpush1.bf16.msra.mxu0 %v5104_v12  ;;  %v5130_v12 = vld [vmem:[#allocation10 + $0x44] ss:$8 sps:$4 sm:$0xff]   ;;  %s6906_s18 = sld [smem:[#allocation67_spill]]  ;;  %s5949_s24 = scalar_lea.vmem %s6747_s14, 16 }
 0x166   : > { %1218 = vmatprep.subr.bf16.mxu0 %v5105_v13  ;;  %v5128_v13 = vld [vmem:[#allocation10 + $0x40] ss:$8 sps:$4 sm:$0xff]   ;;  %p5950_p4 = scmp.ne.s32.totalorder %s6747_s14, %s5949_s24  ;;  %p6907_p7 = scmp.ne.s32.totalorder %s6873_s25, 0 }
 0x168   : > { %s1082_s17 = scalar_lea.vmem %s6902_s1, %s6577_s28  ;;  %s6905_s28 = sld [smem:[#allocation66_spill]] }
 0x169   : > { %1219 = vmatpush1.bf16.msra.mxu0 %v5107_v14  ;;  %v5136_v14 = vld [vmem:[#allocation10 + $0x34] ss:$8 sps:$4 sm:$0xff]   ;;  %p5951_p6 = pnand %p5950_p4, %p6907_p7 }
 0x16a   : > { %1220 = vmatprep.subr.bf16.mxu0 %v5108_v15  ;;  %v5134_v15 = vld [vmem:[#allocation10 + $0x30] ss:$8 sps:$4 sm:$0xff]  }
 0x16b   : > { %p5952_p12 = pneg %p5951_p6 }
 0x16d   : > { %1221 = vmatpush1.bf16.msra.mxu0 %v5110_v16  ;;  %v5142_v16 = vld [vmem:[#allocation10 + $0x24] ss:$8 sps:$4 sm:$0xff]  }
 0x16e   : > { %1860 = vmatprep.subr.bf16.mxu0 %v5121_v19  ;;  %v5146_v19 = vld [vmem:[#allocation10 + $0x10] ss:$8 sps:$4 sm:$0xff]  }
 0x170   : > { %1239 = vmatmul.mubr.bf16.vlgmr.msra.gmra.mxu0 %v5111_v17  ;;  %v5140_v17 = vld [vmem:[#allocation10 + $0x20] ss:$8 sps:$4 sm:$0xff]  }
 0x171   : > { %1861 = vmatpush1.bf16.msra.mxu0 %v5119_v18  ;;  %v5148_v18 = vld [vmem:[#allocation10 + $0x14] ss:$8 sps:$4 sm:$0xff]  }
 0x172   : > { %1862 = vmatprep.subr.bf16.mxu0 %v5127_v21  ;;  %v5152_v21 = vld [vmem:[#allocation10] ss:$8 sps:$4 sm:$0xff]  }
 0x175   : > { %1863 = vmatpush1.bf16.msra.mxu0 %v5125_v20  ;;  %v5154_v20 = vld [vmem:[#allocation10 + $0x4] ss:$8 sps:$4 sm:$0xff]  }
 0x176   : > { %1864 = vmatprep.subr.bf16.mxu0 %v5133_v23  ;;  %v5158_v23 = vld [vmem:[#allocation10 + $0xf0] ss:$8 sps:$4 sm:$0xff]  }
 0x179   : > { %1865 = vmatpush1.bf16.msra.mxu0 %v5131_v22  ;;  %v5160_v22 = vld [vmem:[#allocation10 + $0xf4] ss:$8 sps:$4 sm:$0xff]  }
 0x17a   : > { %1866 = vmatprep.subr.bf16.mxu0 %v5139_v25  ;;  %v5164_v25 = vld [vmem:[#allocation10 + $0xe0] ss:$8 sps:$4 sm:$0xff]  }
 0x17d   : > { %1867 = vmatpush1.bf16.msra.mxu0 %v5137_v24  ;;  %v5166_v24 = vld [vmem:[#allocation10 + $0xe4] ss:$8 sps:$4 sm:$0xff]  }
 0x17e   : > { %1868 = vmatprep.subr.bf16.mxu0 %v5145_v27  ;;  %v5170_v27 = vld [vmem:[#allocation10 + $0xd0] ss:$8 sps:$4 sm:$0xff]  }
 0x181   : > { %1869 = vmatpush1.bf16.msra.mxu0 %v5143_v26  ;;  %v5172_v26 = vld [vmem:[#allocation10 + $0xd4] ss:$8 sps:$4 sm:$0xff]  }
 0x182   : > { %1870 = vmatprep.subr.bf16.mxu0 %v5151_v29  ;;  %v5176_v29 = vld [vmem:[#allocation10 + $0xc0] ss:$8 sps:$4 sm:$0xff]  }
 0x185   : > { %1871 = vmatpush1.bf16.msra.mxu0 %v5149_v28  ;;  %v5178_v28 = vld [vmem:[#allocation10 + $0xc4] ss:$8 sps:$4 sm:$0xff]  }
 0x186   : > { %1872 = vmatprep.subr.bf16.mxu0 %v5157_v31  ;;  %v5182_v31 = vld [vmem:[#allocation10 + $0xb0] ss:$8 sps:$4 sm:$0xff]  }
 0x189   : > { %1873 = vmatpush1.bf16.msra.mxu0 %v5155_v30  ;;  %v5184_v30 = vld [vmem:[#allocation10 + $0xb4] ss:$8 sps:$4 sm:$0xff]  }
 0x18a   : > { %1874 = vmatprep.subr.bf16.mxu0 %v5163_v33  ;;  %v5189_v33 = vld [vmem:[#allocation10 + $0xa0] ss:$8 sps:$4 sm:$0xff]  }
 0x18d   : > { %1875 = vmatpush1.bf16.msra.mxu0 %v5161_v32  ;;  %v5191_v32 = vld [vmem:[#allocation10 + $0xa4] ss:$8 sps:$4 sm:$0xff]  }
 0x18e   : > { %1876 = vmatprep.subr.bf16.mxu0 %v5169_v35  ;;  %v5195_v35 = vld [vmem:[#allocation10 + $0x90] ss:$8 sps:$4 sm:$0xff]  }
 0x191   : > { %1877 = vmatpush2.bf16.msra.mxu0 %v5167_v34  ;;  %v5197_v34 = vld [vmem:[#allocation10 + $0x94] ss:$8 sps:$4 sm:$0xff]  }
 0x192   : > { %1878 = vmatprep.subr.bf16.mxu0 %v5175_v37  ;;  %v5201_v37 = vld [vmem:[#allocation10 + $0x80] ss:$8 sps:$4 sm:$0xff]  }
 0x195   : > { %1879 = vmatpush2.bf16.msra.mxu0 %v5173_v36  ;;  %v5203_v36 = vld [vmem:[#allocation10 + $0x84] ss:$8 sps:$4 sm:$0xff]  }
 0x196   : > { %1880 = vmatprep.subr.bf16.mxu0 %v5181_v39  ;;  %v5204_v39 = vld [vmem:[#allocation10 + $0x190] ss:$8 sps:$4 sm:$0xff]  }
 0x199   : > { %1881 = vmatpush2.bf16.msra.mxu0 %v5179_v38  ;;  %v5206_v38 = vld [vmem:[#allocation10 + $0x194] ss:$8 sps:$4 sm:$0xff]  }
 0x19a   : > { %1882 = vmatprep.subr.bf16.mxu0 %v5187_v41  ;;  %v5213_v41 = vld [vmem:[#allocation10 + $0x184] ss:$8 sps:$4 sm:$0xff]  }
 0x19d   : > { %1883 = vmatpush2.bf16.msra.mxu0 %v5185_v40  ;;  %v5209_v40 = vld [vmem:[#allocation10 + $0x274] ss:$8 sps:$4 sm:$0xff]  }
 0x19e   : > { %1884 = vmatprep.subr.bf16.mxu0 %v5194_v43  ;;  %v5237_v43 = vld [vmem:[#allocation13 + $0x74] ss:$8 sps:$4 sm:$0xff]  }
 0x1a1   : > { %1885 = vmatpush2.bf16.msra.mxu0 %v5192_v42  ;;  %v5211_v42 = vld [vmem:[#allocation10 + $0x180] ss:$8 sps:$4 sm:$0xff]  }
 0x1a2   : > { %1886 = vmatprep.subr.bf16.mxu0 %v5200_v45  ;;  %v5210_v45 = vld [vmem:[%s6522_s16] ss:$0 sps:$4 sm:$0xff]  }
 0x1a5   : > { %1887 = vmatpush2.bf16.msra.mxu0 %v5198_v44 }
 0x1a6   : > { %1888 = vmatprep.subr.bf16.mxu0 %v5206_v38  ;;  %v5270_v38 = vld [vmem:[#allocation13 + $0x124] ss:$8 sps:$4 sm:$0xff]  }
 0x1a9   : > { %1889 = vmatpush2.bf16.msra.mxu0 %v5204_v39  ;;  %v5271_v39 = vld [vmem:[#allocation13 + $0x10] ss:$8 sps:$4 sm:$0xff]  }
 0x1aa   : > { %1890 = vmatprep.subr.bf16.mxu0 %v5213_v41  ;;  %v5274_v41 = vld [vmem:[#allocation13 + $0x110] ss:$8 sps:$4 sm:$0xff]  }
 0x1ad   : > { %1891 = vmatpush2.bf16.msra.mxu0 %v5211_v42  ;;  %v5276_v42 = vld [vmem:[#allocation13 + $0x114] ss:$8 sps:$4 sm:$0xff]  }
 0x1ae   : > { %2457 = vmatprep.subr.bf16.mxu0 %v5237_v43  ;;  %v5279_v43 = vld [vmem:[#allocation13 + $0x4] ss:$8 sps:$4 sm:$0xff]  }
 0x230   : > { %v1240_v51 = vpop.f32.mrf.mxu0 }
 0x231   : > { %v1241_v58 = vadd.f32 %v1240_v51, %v1113_v53  ;;  %v5216_v51 = vld [vmem:[#allocation10 + $0x264] ss:$8 sps:$4 sm:$0xff]  }
 0x232   : > { %v1242_v54 = vpop.f32.mrf.mxu0 }
 0x233   : > { %v1243_v56 = vadd.f32 %v1242_v54, %v1117_v52  ;;  %v1249_v1 = vmax.f32 %v1241_v58, 0.0  ;;  %v5214_v54 = vld [vmem:[#allocation10 + $0x260] ss:$8 sps:$4 sm:$0xff]   ;;  %v5219_v58 = vld [vmem:[#allocation10 + $0x254] ss:$8 sps:$4 sm:$0xff]  }
 0x234   : > { %v1244_v55 = vpop.f32.mrf.mxu0 }
 0x235   : > { %v1245_v57 = vadd.f32 %v1244_v55, %v1113_v53  ;;  %v1250_v62 = vmax.f32 %v1243_v56, 0.0  ;;  %v5235_v55 = vld [vmem:[#allocation13 + $0x70] ss:$8 sps:$4 sm:$0xff]  }
 0x236   : > { %v1246_v59 = vpop.f32.mrf.mxu0 }
 0x237   : > { %v1247_v60 = vadd.f32 %v1246_v59, %v1117_v52  ;;  %v1251_v61 = vmax.f32 %v1245_v57, 0.0  ;;  %v5243_v59 = vld [vmem:[#allocation13 + $0x64] ss:$8 sps:$4 sm:$0xff]  }
 0x239   : > { %v1252_v63 = vmax.f32 %v1247_v60, 0.0  ;;  %v6593_v4 = vpack.c.bf16 %v1251_v61, %v1249_v1  ;;  %v5217_v61 = vld [vmem:[#allocation10 + $0x250] ss:$8 sps:$4 sm:$0xff]  }
 0x23b   : > { %v6591_v2 = vpack.c.bf16 %v1252_v63, %v1250_v62  ;;  %v5241_v62 = vld [vmem:[#allocation13 + $0x60] ss:$8 sps:$4 sm:$0xff]  }
 0x23c   : > { %v5222_v63 = vld [vmem:[#allocation10 + $0x244] ss:$8 sps:$4 sm:$0xff]  }
 0x23d   : > { %1284 = vmatprep.subr.bf16.mxu1 %v6591_v2 }
 0x23e   : > { %1285 = vmatpush1.bf16.msra.mxu1 %v6593_v4 }
 0x23f   : > { %1819 = vmatprep.subr.bf16.mxu1 %v5115_v3  ;;  %v5249_v3 = vld [vmem:[#allocation13 + $0x54] ss:$8 sps:$4 sm:$0xff]  }
 0x241   : > { %4346 = vmatmul.mubr.msk.bf16.vlgmr.msra.gmra.mxu1 %vm1263_vm0, %v6597_v5 }
 0x242   : > { %1820 = vmatpush1.bf16.msra.mxu1 %v5113_v6  ;;  %1312 = vmatprep.mubr.bf16.mxu1 %v6077_v0 }
 0x243   : > { %1821 = vmatprep.subr.bf16.mxu1 %v5118_v7  ;;  %v5220_v7 = vld [vmem:[#allocation10 + $0x240] ss:$8 sps:$4 sm:$0xff]  }
 0x246   : > { %1822 = vmatpush1.bf16.msra.mxu1 %v5116_v8  ;;  %v5247_v8 = vld [vmem:[#allocation13 + $0x50] ss:$8 sps:$4 sm:$0xff]  }
 0x247   : > { %1823 = vmatprep.subr.bf16.mxu1 %v5124_v9  ;;  %v5225_v9 = vld [vmem:[#allocation10 + $0x234] ss:$8 sps:$4 sm:$0xff]  }
 0x249   : > { %4347 = vmatmul.mubr.msk.bf16.gmra.mxu1 %vm1263_vm0, %v6604_v10 }
 0x24a   : > { %1824 = vmatpush1.bf16.msra.mxu1 %v5122_v11 }
 0x24b   : > { %1825 = vmatprep.subr.bf16.mxu1 %v5130_v12  ;;  %v5223_v12 = vld [vmem:[#allocation10 + $0x230] ss:$8 sps:$4 sm:$0xff]  }
 0x24e   : > { %1826 = vmatpush1.bf16.msra.mxu1 %v5128_v13  ;;  %v5228_v13 = vld [vmem:[#allocation10 + $0x224] ss:$8 sps:$4 sm:$0xff]  }
 0x24f   : > { %1827 = vmatprep.subr.bf16.mxu1 %v5136_v14  ;;  %v5226_v14 = vld [vmem:[#allocation10 + $0x220] ss:$8 sps:$4 sm:$0xff]  }
 0x252   : > { %1828 = vmatpush1.bf16.msra.mxu1 %v5134_v15  ;;  %v5231_v15 = vld [vmem:[#allocation10 + $0x214] ss:$8 sps:$4 sm:$0xff]  }
 0x253   : > { %1829 = vmatprep.subr.bf16.mxu1 %v5142_v16  ;;  %v5229_v16 = vld [vmem:[#allocation10 + $0x210] ss:$8 sps:$4 sm:$0xff]  }
 0x256   : > { %1830 = vmatpush1.bf16.msra.mxu1 %v5140_v17  ;;  %v5234_v17 = vld [vmem:[#allocation10 + $0x204] ss:$8 sps:$4 sm:$0xff]  }
 0x257   : > { %1831 = vmatprep.subr.bf16.mxu1 %v5148_v18  ;;  %v5232_v18 = vld [vmem:[#allocation10 + $0x200] ss:$8 sps:$4 sm:$0xff]  }
 0x25a   : > { %1832 = vmatpush1.bf16.msra.mxu1 %v5146_v19  ;;  %v5240_v19 = vld [vmem:[#allocation13 + $0x174] ss:$8 sps:$4 sm:$0xff]  }
 0x25b   : > { %1833 = vmatprep.subr.bf16.mxu1 %v5154_v20 }
 0x25e   : > { %1834 = vmatpush1.bf16.msra.mxu1 %v5152_v21  ;;  %v5238_v21 = vld [vmem:[#allocation13 + $0x170] ss:$8 sps:$4 sm:$0xff]  }
 0x25f   : > { %1835 = vmatprep.subr.bf16.mxu1 %v5160_v22 }
 0x262   : > { %1836 = vmatpush2.bf16.msra.mxu1 %v5158_v23  ;;  %v5246_v23 = vld [vmem:[#allocation13 + $0x164] ss:$8 sps:$4 sm:$0xff]  }
 0x263   : > { %1837 = vmatprep.subr.bf16.mxu1 %v5166_v24  ;;  %v5244_v24 = vld [vmem:[#allocation13 + $0x160] ss:$8 sps:$4 sm:$0xff]  }
 0x266   : > { %1838 = vmatpush2.bf16.msra.mxu1 %v5164_v25  ;;  %v5252_v25 = vld [vmem:[#allocation13 + $0x154] ss:$8 sps:$4 sm:$0xff]  }
 0x267   : > { %1839 = vmatprep.subr.bf16.mxu1 %v5172_v26  ;;  %v5250_v26 = vld [vmem:[#allocation13 + $0x150] ss:$8 sps:$4 sm:$0xff]  }
 0x26a   : > { %1840 = vmatpush2.bf16.msra.mxu1 %v5170_v27  ;;  %v5255_v27 = vld [vmem:[#allocation13 + $0x44] ss:$8 sps:$4 sm:$0xff]  }
 0x26b   : > { %1841 = vmatprep.subr.bf16.mxu1 %v5178_v28  ;;  %v5253_v28 = vld [vmem:[#allocation13 + $0x40] ss:$8 sps:$4 sm:$0xff]  }
 0x26e   : > { %1842 = vmatpush2.bf16.msra.mxu1 %v5176_v29  ;;  %v5258_v29 = vld [vmem:[#allocation13 + $0x144] ss:$8 sps:$4 sm:$0xff]  }
 0x26f   : > { %1843 = vmatprep.subr.bf16.mxu1 %v5184_v30  ;;  %v5256_v30 = vld [vmem:[#allocation13 + $0x140] ss:$8 sps:$4 sm:$0xff]  }
 0x272   : > { %1844 = vmatpush2.bf16.msra.mxu1 %v5182_v31  ;;  %v5261_v31 = vld [vmem:[#allocation13 + $0x34] ss:$8 sps:$4 sm:$0xff]  }
 0x273   : > { %1845 = vmatprep.subr.bf16.mxu1 %v5191_v32  ;;  %v5259_v32 = vld [vmem:[#allocation13 + $0x30] ss:$8 sps:$4 sm:$0xff]  }
 0x276   : > { %1846 = vmatpush2.bf16.msra.mxu1 %v5189_v33  ;;  %v5264_v33 = vld [vmem:[#allocation13 + $0x134] ss:$8 sps:$4 sm:$0xff]  }
 0x277   : > { %1847 = vmatprep.subr.bf16.mxu1 %v5197_v34  ;;  %v5262_v34 = vld [vmem:[#allocation13 + $0x130] ss:$8 sps:$4 sm:$0xff]  }
 0x27a   : > { %1848 = vmatpush2.bf16.msra.mxu1 %v5195_v35  ;;  %v5267_v35 = vld [vmem:[#allocation13 + $0x24] ss:$8 sps:$4 sm:$0xff]  }
 0x27b   : > { %1849 = vmatprep.subr.bf16.mxu1 %v5203_v36  ;;  %v5265_v36 = vld [vmem:[#allocation13 + $0x20] ss:$8 sps:$4 sm:$0xff]  }
 0x27e   : > { %1850 = vmatpush2.bf16.msra.mxu1 %v5201_v37  ;;  %v5268_v37 = vld [vmem:[#allocation13 + $0x120] ss:$8 sps:$4 sm:$0xff]  }
 0x27f   : > { %1901 = vmatprep.subr.bf16.mxu1 %v5209_v40  ;;  %v5273_v40 = vld [vmem:[#allocation13 + $0x14] ss:$8 sps:$4 sm:$0xff]  }
 0x301   : > { %v1304_v44 = vpop.f32.mrf.mxu1 }
 0x302   : > { %v1403_v46 = vpack.c.bf16 %v1304_v44, %v1304_v44  ;;  %v5282_v44 = vld [vmem:[#allocation13 + $0x104] ss:$8 sps:$4 sm:$0xff]  }
 0x303   : > { %v1306_v50 = vpop.f32.mrf.mxu1 }
 0x304   : > { %1851 = vmatprep.mubr.bf16.mxu1 %v1403_v46  ;;  %v1404_v56 = vpack.c.bf16 %v1306_v50, %v1306_v50  ;;  %v5280_v46 = vld [vmem:[#allocation13 + $0x100] ss:$8 sps:$4 sm:$0xff]   ;;  %v5288_v50 = vld [vmem:[#allocation13 + $0x1f4] ss:$8 sps:$4 sm:$0xff]  }
 0x305   : > { %v1308_v52 = vpop.f32.mrf.mxu1  ;;  %1852 = vmatmul.mubr.bf16.vlgmr.msra.gmra.mxu1 %v5210_v45  ;;  %v5277_v45 = vld [vmem:[#allocation13] ss:$8 sps:$4 sm:$0xff]  }
 0x306   : > { %v1405_v53 = vpack.c.bf16 %v1308_v52, %v1308_v52  ;;  %1902 = vmatpush1.bf16.msra.mxu1 %v5207_v47  ;;  %1933 = vmatprep.mubr.bf16.mxu1 %v6077_v0  ;;  %v5285_v47 = vld [vmem:[#allocation13 + $0xf4] ss:$8 sps:$4 sm:$0xff]   ;;  %v5286_v52 = vld [vmem:[#allocation13 + $0x1f0] ss:$8 sps:$4 sm:$0xff]  }
 0x307   : > { %v1310_v57 = vpop.f32.mrf.mxu1  ;;  %1903 = vmatprep.subr.bf16.mxu1 %v5216_v51  ;;  %v5283_v51 = vld [vmem:[#allocation13 + $0xf0] ss:$8 sps:$4 sm:$0xff]  }
 0x308   : > { %1892 = vmatprep.mubr.bf16.mxu0 %v1405_v53  ;;  %v1406_v22 = vpack.c.bf16 %v1310_v57, %v1310_v57  ;;  %v5291_v53 = vld [vmem:[#allocation13 + $0xe4] ss:$8 sps:$4 sm:$0xff]   ;;  %v5297_v57 = vld [vmem:[#allocation13 + $0xd4] ss:$8 sps:$4 sm:$0xff]  }
 0x309   : > { %1893 = vmatmul.mubr.bf16.vlgmr.msra.gmra.mxu0 %v1404_v56  ;;  %v1314_v60 = vpop.f32.mrf.mxu1  ;;  %v5292_v56 = vld [vmem:[#allocation13 + $0x1e0] ss:$8 sps:$4 sm:$0xff]  }
 0x30a   : > { %1904 = vmatpush1.bf16.msra.mxu1 %v5214_v54  ;;  %2458 = vmatpush1.bf16.msra.mxu0 %v5235_v55  ;;  %v2043_v20 = vpack.c.bf16 %v1314_v60, %v1314_v60  ;;  %v5294_v54 = vld [vmem:[#allocation13 + $0x1e4] ss:$8 sps:$4 sm:$0xff]   ;;  %v5289_v55 = vld [vmem:[#allocation13 + $0xe0] ss:$8 sps:$4 sm:$0xff]   ;;  %v5298_v60 = vld [vmem:[#allocation13 + $0x1d0] ss:$8 sps:$4 sm:$0xff]  }
 0x30b   : > { %1905 = vmatprep.subr.bf16.mxu1 %v5219_v58  ;;  %v6610_v1 = vpop.f32.mrf.mxu1  ;;  %2459 = vmatprep.subr.bf16.mxu0 %v5243_v59  ;;  %v5300_v58 = vld [vmem:[#allocation13 + $0x1d4] ss:$8 sps:$4 sm:$0xff]   ;;  %v5295_v59 = vld [vmem:[#allocation13 + $0xd0] ss:$8 sps:$4 sm:$0xff]  }
 0x30d   : > { %v1318_v6 = vpop.f32.mrf.mxu1 }
 0x30e   : > { %1906 = vmatpush1.bf16.msra.mxu1 %v5217_v61  ;;  %2460 = vmatpush1.bf16.msra.mxu0 %v5241_v62  ;;  %v5303_v61 = vld [vmem:[#allocation13 + $0xc4] ss:$8 sps:$4 sm:$0xff]   ;;  %v5301_v62 = vld [vmem:[#allocation13 + $0xc0] ss:$8 sps:$4 sm:$0xff]   ;;  %v5309_v6 = vld [vmem:[#allocation13 + $0xb4] ss:$8 sps:$4 sm:$0xff]  }
 0x30f   : > { %1907 = vmatprep.subr.bf16.mxu1 %v5222_v63  ;;  %v1319_v11 = vpop.f32.mrf.mxu1  ;;  %2461 = vmatprep.subr.bf16.mxu0 %v5249_v3  ;;  %v5306_v63 = vld [vmem:[#allocation13 + $0x1c4] ss:$8 sps:$4 sm:$0xff]   ;;  %v5304_v3 = vld [vmem:[#allocation13 + $0x1c0] ss:$8 sps:$4 sm:$0xff]  }
 0x310   : > { %v5315_v11 = vld [vmem:[#allocation13 + $0xa4] ss:$8 sps:$4 sm:$0xff]  }
 0x312   : > { %1908 = vmatpush1.bf16.msra.mxu1 %v5220_v7  ;;  %2462 = vmatpush1.bf16.msra.mxu0 %v5247_v8  ;;  %v5307_v7 = vld [vmem:[#allocation13 + $0xb0] ss:$8 sps:$4 sm:$0xff]   ;;  %v5312_v8 = vld [vmem:[#allocation13 + $0x1b4] ss:$8 sps:$4 sm:$0xff]  }
 0x313   : > { %1909 = vmatprep.subr.bf16.mxu1 %v5225_v9  ;;  %2463 = vmatprep.subr.bf16.mxu0 %v5255_v27  ;;  %v5310_v9 = vld [vmem:[#allocation13 + $0x1b0] ss:$8 sps:$4 sm:$0xff]  }
 0x316   : > { %1910 = vmatpush1.bf16.msra.mxu1 %v5223_v12  ;;  %2464 = vmatpush1.bf16.msra.mxu0 %v5253_v28  ;;  %v5313_v12 = vld [vmem:[#allocation13 + $0xa0] ss:$8 sps:$4 sm:$0xff]  }
 0x317   : > { %1911 = vmatprep.subr.bf16.mxu1 %v5228_v13  ;;  %2465 = vmatprep.subr.bf16.mxu0 %v5261_v31  ;;  %v5318_v13 = vld [vmem:[#allocation13 + $0x1a4] ss:$8 sps:$4 sm:$0xff]  }
 0x31a   : > { %1912 = vmatpush1.bf16.msra.mxu1 %v5226_v14  ;;  %2466 = vmatpush1.bf16.msra.mxu0 %v5259_v32  ;;  %v5316_v14 = vld [vmem:[#allocation13 + $0x1a0] ss:$8 sps:$4 sm:$0xff]  }
 0x31b   : > { %1913 = vmatprep.subr.bf16.mxu1 %v5231_v15  ;;  %2467 = vmatprep.subr.bf16.mxu0 %v5267_v35  ;;  %v5321_v15 = vld [vmem:[#allocation13 + $0x94] ss:$8 sps:$4 sm:$0xff]  }
 0x31e   : > { %1914 = vmatpush1.bf16.msra.mxu1 %v5229_v16  ;;  %2468 = vmatpush1.bf16.msra.mxu0 %v5265_v36  ;;  %v5319_v16 = vld [vmem:[#allocation13 + $0x90] ss:$8 sps:$4 sm:$0xff]  }
 0x31f   : > { %1915 = vmatprep.subr.bf16.mxu1 %v5234_v17  ;;  %2469 = vmatprep.subr.bf16.mxu0 %v5273_v40  ;;  %v5324_v17 = vld [vmem:[#allocation13 + $0x194] ss:$8 sps:$4 sm:$0xff]  }
 0x322   : > { %1916 = vmatpush1.bf16.msra.mxu1 %v5232_v18  ;;  %2470 = vmatpush1.bf16.msra.mxu0 %v5271_v39  ;;  %v5322_v18 = vld [vmem:[#allocation13 + $0x190] ss:$8 sps:$4 sm:$0xff]  }
 0x323   : > { %2498 = vmatprep.subr.bf16.mxu1 %v5240_v19  ;;  %2471 = vmatprep.subr.bf16.mxu0 %v5279_v43  ;;  %v5325_v19 = vld [vmem:[#allocation13 + $0x80] ss:$8 sps:$4 sm:$0xff]  }
 0x325   : > { %1934 = vmatmul.mubr.bf16.vlgmr.msra.gmra.mxu1 %v1406_v22  ;;  %v5330_v22 = vld [vmem:[#allocation13 + $0x184] ss:$8 sps:$4 sm:$0xff]  }
 0x326   : > { %2499 = vmatpush1.bf16.msra.mxu1 %v5238_v21  ;;  %2530 = vmatprep.mubr.bf16.mxu1 %v2043_v20  ;;  %v5327_v20 = vld [vmem:[#allocation13 + $0x84] ss:$8 sps:$4 sm:$0xff]   ;;  %v5328_v21 = vld [vmem:[#allocation13 + $0x180] ss:$8 sps:$4 sm:$0xff]  }
 0x327   : > { %2500 = vmatprep.subr.bf16.mxu1 %v5246_v23  ;;  %2472 = vmatpush1.bf16.msra.mxu0 %v5277_v45  ;;  %v5333_v23 = vld [vmem:[#allocation13 + $0x274] ss:$8 sps:$4 sm:$0xff]  }
 0x328   : > { %2473 = vmatprep.subr.bf16.mxu0 %v5285_v47 }
 0x32a   : > { %2501 = vmatpush1.bf16.msra.mxu1 %v5244_v24  ;;  %v5335_v24 = vld [vmem:[#allocation16 + $0x78] sm:$0xff]  }
 0x32b   : > { %2502 = vmatprep.subr.bf16.mxu1 %v5252_v25  ;;  %2474 = vmatpush2.bf16.msra.mxu0 %v5283_v51 }
 0x32c   : > { %2475 = vmatprep.subr.bf16.mxu0 %v5291_v53 }
 0x32e   : > { %2503 = vmatpush1.bf16.msra.mxu1 %v5250_v26 }
 0x32f   : > { %2504 = vmatprep.subr.bf16.mxu1 %v5258_v29  ;;  %2476 = vmatpush2.bf16.msra.mxu0 %v5289_v55 }
 0x330   : > { %2477 = vmatprep.subr.bf16.mxu0 %v5297_v57 }
 0x332   : > { %2505 = vmatpush1.bf16.msra.mxu1 %v5256_v30 }
 0x333   : > { %2506 = vmatprep.subr.bf16.mxu1 %v5264_v33  ;;  %2478 = vmatpush2.bf16.msra.mxu0 %v5295_v59  ;;  %v1407_v33 = vld [vmem:[#allocation11] sm:$0x3] }
 0x334   : > { %2479 = vmatprep.subr.bf16.mxu0 %v5303_v61  ;;  %v1416_v35 = vrot.slane %v1407_v33, %v6585_v48 }
 0x336   : > { %2507 = vmatpush1.bf16.msra.mxu1 %v5262_v34  ;;  %v1412_v34 = vrot.slane %v1407_v33, %v6587_v49  ;;  %v5369_v33 = vld [vmem:[#allocation13 + $0x204] ss:$8 sps:$4 sm:$0xff]  }
 0x337   : > { %2508 = vmatprep.subr.bf16.mxu1 %v5270_v38  ;;  %2480 = vmatpush2.bf16.msra.mxu0 %v5301_v62 }
 0x338   : > { %2481 = vmatprep.subr.bf16.mxu0 %v5309_v6  ;;  %v5331_v6 = vld [vmem:[#allocation13 + $0x270] ss:$8 sps:$4 sm:$0xff]  }
 0x33a   : > { %2509 = vmatpush1.bf16.msra.mxu1 %v5268_v37 }
 0x33b   : > { %2510 = vmatprep.subr.bf16.mxu1 %v5276_v42  ;;  %2482 = vmatpush2.bf16.msra.mxu0 %v5307_v7 }
 0x33c   : > { %2483 = vmatprep.subr.bf16.mxu0 %v5315_v11  ;;  %v5339_v11 = vld [vmem:[#allocation13 + $0x264] ss:$8 sps:$4 sm:$0xff]  }
 0x33e   : > { %2511 = vmatpush1.bf16.msra.mxu1 %v5274_v41 }
 0x33f   : > { %2512 = vmatprep.subr.bf16.mxu1 %v5282_v44  ;;  %2484 = vmatpush2.bf16.msra.mxu0 %v5313_v12  ;;  %v5340_v12 = vld [vmem:[#allocation16 + $0x70] sm:$0xff]  }
 0x340   : > { %2485 = vmatprep.subr.bf16.mxu0 %v5321_v15  ;;  %v5344_v15 = vld [vmem:[#allocation13 + $0x254] ss:$8 sps:$4 sm:$0xff]  }
 0x342   : > { %2513 = vmatpush1.bf16.msra.mxu1 %v5280_v46 }
 0x343   : > { %2514 = vmatprep.subr.bf16.mxu1 %v5288_v50  ;;  %2486 = vmatpush2.bf16.msra.mxu0 %v5319_v16  ;;  %v5345_v16 = vld [vmem:[#allocation16 + $0x68] sm:$0xff]  }
 0x344   : > { %2487 = vmatprep.subr.bf16.mxu0 %v5327_v20  ;;  %v5350_v20 = vld [vmem:[#allocation16 + $0x60] sm:$0xff]  }
 0x346   : > { %2515 = vmatpush2.bf16.msra.mxu1 %v5286_v52 }
 0x347   : > { %2516 = vmatprep.subr.bf16.mxu1 %v5294_v54  ;;  %2488 = vmatpush2.bf16.msra.mxu0 %v5325_v19  ;;  %v5349_v19 = vld [vmem:[#allocation13 + $0x244] ss:$8 sps:$4 sm:$0xff]  }
 0x348   : > { %2539 = vmatprep.subr.bf16.mxu0 %v5333_v23  ;;  %v5355_v23 = vld [vmem:[#allocation16 + $0x58] sm:$0xff]  }
 0x34a   : > { %2517 = vmatpush2.bf16.msra.mxu1 %v5292_v56 }
 0x34b   : > { %2518 = vmatprep.subr.bf16.mxu1 %v5300_v58 }
 0x34e   : > { %2519 = vmatpush2.bf16.msra.mxu1 %v5298_v60 }
 0x34f   : > { %2520 = vmatprep.subr.bf16.mxu1 %v5306_v63  ;;  %v5334_v63 = vld [vmem:[%s1074_s21] ss:$0 sps:$4 sm:$0x11]   ;;  %s4635_s21 = sshll.u32 %s6232_s26, 4  ;;  %s6080_s26 = smov [#allocation31]  }
 0x350   : > { %s6745_s1 = scalar_lea.hbm %s6906_s18, %s4635_s21  ;;  %s5953_s0 = sshll.u32 %s6080_s26, 4  ;;  %s5954_s0 = int_to_ptr.vmem [resolvable:$false] %s5953_s0 }
 0x351   : > { %s5955_s8 = scalar_lea.vmem %s5954_s0, 32  ;;  %p5956_p0 = scmp.lt.s32.totalorder %s6747_s14, %s5954_s0 }
 0x352   : > { %2521 = vmatpush2.bf16.msra.mxu1 %v5304_v3  ;;  %p5957_p5 = scmp.lt.s32.totalorder %s5955_s8, %s5949_s24 }
 0x353   : > { %2522 = vmatprep.subr.bf16.mxu1 %v5312_v8  ;;  %v5336_v8 = vld [vmem:[#allocation16 + $0x38] sm:$0xff]  }
 0x354   : > { %p5958_p8 = por %p5957_p5, %p5956_p0 }
 0x356   : > { %2523 = vmatpush2.bf16.msra.mxu1 %v5310_v9  ;;  %p5959_p1 = pnand %p5958_p8, %p5952_p12 }
 0x357   : > { %2524 = vmatprep.subr.bf16.mxu1 %v5318_v13  ;;  %v5337_v13 = vld [vmem:[#allocation13 + $0x260] ss:$8 sps:$4 sm:$0xff]  }
 0x35a   : > { %2525 = vmatpush2.bf16.msra.mxu1 %v5316_v14  ;;  %v5341_v14 = vld [vmem:[#allocation16 + $0x30] sm:$0xff]  }
 0x35b   : > { %2526 = vmatprep.subr.bf16.mxu1 %v5324_v17  ;;  %v5342_v17 = vld [vmem:[#allocation13 + $0x250] ss:$8 sps:$4 sm:$0xff]  }
 0x35e   : > { %2527 = vmatpush2.bf16.msra.mxu1 %v5322_v18  ;;  %v5346_v18 = vld [vmem:[#allocation16 + $0x28] sm:$0xff]  }
 0x35f   : > { %2528 = vmatprep.subr.bf16.mxu1 %v5330_v22  ;;  %v5354_v22 = vld [vmem:[#allocation13 + $0x234] ss:$8 sps:$4 sm:$0xff]  }
 0x362   : > { %2529 = vmatpush2.bf16.msra.mxu1 %v5328_v21  ;;  %v5347_v21 = vld [vmem:[#allocation13 + $0x240] ss:$8 sps:$4 sm:$0xff]  }
 0x363   : > { %4639 = vmatprep.subr.bf16.mxu1 %v5335_v24  ;;  %v5352_v24 = vld [vmem:[#allocation13 + $0x230] ss:$8 sps:$4 sm:$0xff]  }
 0x3c5   : > { %v1853_v25 = vpop.f32.mrf.mxu1 }
 0x3c6   : > { %v1854_v36 = vadd.f32 %v1853_v25, %v1412_v34  ;;  %v5359_v25 = vld [vmem:[#allocation13 + $0x224] ss:$8 sps:$4 sm:$0xff]  }
 0x3c7   : > { %v1855_v26 = vpop.f32.mrf.mxu1  ;;  %v5370_v34 = vld [vmem:[#allocation16 + $0x40] sm:$0xff]  }
 0x3c8   : > { %v1856_v37 = vadd.f32 %v1855_v26, %v1416_v35  ;;  %v5360_v26 = vld [vmem:[#allocation16 + $0x50] sm:$0xff]   ;;  %v5367_v35 = vld [vmem:[#allocation13 + $0x200] ss:$8 sps:$4 sm:$0xff]  }
 0x3c9   : > { %v1857_v27 = vpop.f32.mrf.mxu1  ;;  %v1894_v28 = vpop.f32.mrf.mxu0 }
 0x3ca   : > { %v1895_v38 = vadd.f32 %v1894_v28, %v1854_v36  ;;  %v5357_v27 = vld [vmem:[#allocation13 + $0x220] ss:$8 sps:$4 sm:$0xff]   ;;  %v5361_v28 = vld [vmem:[#allocation16 + $0x10] sm:$0xff]  }
 0x3cb   : > { %v1858_v29 = vpop.f32.mrf.mxu1  ;;  %v1896_v30 = vpop.f32.mrf.mxu0  ;;  %v5371_v36 = vld [vmem:[#allocation16] sm:$0xff]  }
 0x3cc   : > { %v1897_v40 = vadd.f32 %v1896_v30, %v1856_v37  ;;  %v5364_v29 = vld [vmem:[#allocation13 + $0x214] ss:$8 sps:$4 sm:$0xff]   ;;  %v5365_v30 = vld [vmem:[#allocation16 + $0x48] sm:$0xff]  }
 0x3cd   : > { %v1898_v31 = vpop.f32.mrf.mxu0  ;;  %v5372_v37 = vld [vmem:[#allocation19 + $0x78] sm:$0xff]  }
 0x3ce   : > { %v5362_v31 = vld [vmem:[#allocation13 + $0x210] ss:$8 sps:$4 sm:$0xff]  }
 0x3cf   : > { %v1899_v32 = vpop.f32.mrf.mxu0 }
 0x3d0   : > { %v5366_v32 = vld [vmem:[#allocation16 + $0x8] sm:$0xff]  }
 0x3e5   : > { %v1935_v39 = vpop.f32.mrf.mxu1 }
 0x3e6   : > { %v1936_v41 = vadd.f32 %v1935_v39, %v1895_v38  ;;  %v2044_v38 = vpack.c.bf16 %v6610_v1, %v6610_v1  ;;  %v5373_v39 = vld [vmem:[#allocation19 + $0x38] sm:$0xff]   ;;  %v5377_v1 = vld [vmem:[#allocation19 + $0x28] sm:$0xff]  }
 0x3e7   : > { %v1937_v42 = vpop.f32.mrf.mxu1 }
 0x3e8   : > { %v6618_v43 = vmax.f32 %v1936_v41, 0.0  ;;  %v1938_v44 = vadd.f32 %v1937_v42, %v1897_v40  ;;  %v5374_v40 = vld [vmem:[#allocation19 + $0x70] sm:$0xff]  }
 0x3e9   : > { %v1939_v45 = vpop.f32.mrf.mxu1  ;;  %v5375_v42 = vld [vmem:[#allocation19 + $0x30] sm:$0xff]  }
 0x3ea   : > { %v1944_v46 = vrot.slane %v6618_v43, 4  ;;  %v6621_v47 = vmax.f32 %v1938_v44, 0.0  ;;  %v5376_v44 = vld [vmem:[#allocation19 + $0x68] sm:$0xff]   ;;  %v5378_v45 = vld [vmem:[#allocation19 + $0x60] sm:$0xff]  }
 0x3eb   : > { %v1940_v50 = vpop.f32.mrf.mxu1 }
 0x3ec   : > { %v1945_v51 = vadd.f32 %v1944_v46, %v6618_v43  ;;  %v1950_v52 = vrot.slane %v6621_v47, 4  ;;  %v2874_v41 = vpack.c.bf16 %v6621_v47, %v6621_v47  ;;  %v5379_v46 = vld [vmem:[#allocation19 + $0x20] sm:$0xff]   ;;  %v5380_v50 = vld [vmem:[#allocation19 + $0x58] sm:$0xff]  }
 0x3ee   : > { %v1946_v53 = vrot.slane %v1945_v51, 2  ;;  %v1951_v54 = vadd.f32 %v1950_v52, %v6621_v47  ;;  %v5381_v47 = vld [vmem:[#allocation19 + $0x18] sm:$0xff]   ;;  %v5385_v52 = vld [vmem:[#allocation19 + $0x8] sm:$0xff]  }
 0x3f0   : > { %v1952_v55 = vrot.slane %v1951_v54, 2  ;;  %v1947_v56 = vadd.f32 %v1946_v53, %v1945_v51  ;;  %v5383_v51 = vld [vmem:[#allocation19 + $0x10] sm:$0xff]   ;;  %v5386_v53 = vld [vmem:[#allocation19 + $0x40] sm:$0xff]  }
 0x3f2   : > { %v1953_v57 = vadd.f32 %v1952_v55, %v1951_v54  ;;  %v1948_v58 = vrot.slane %v1947_v56, 1  ;;  %v5387_v54 = vld [vmem:[#allocation19] sm:$0xff]   ;;  %v2873_v55 = vpack.c.bf16 %v6618_v43, %v6618_v43  ;;  %v5398_v43 = vld [vmem:[#allocation22 + $0x50] sm:$0xff]  }
 0x3f4   : > { %v1954_v59 = vrot.slane %v1953_v57, 1  ;;  %v1949_v60 = vadd.f32 %v1948_v58, %v1947_v56  ;;  %v5388_v56 = vld [vmem:[#allocation22 + $0x78] sm:$0xff]   ;;  %v5390_v58 = vld [vmem:[#allocation22 + $0x70] sm:$0xff]  }
 0x3f6   : > { %v1957_v61 = vmul.f32 0.125, %v1949_v60  ;;  %v1955_v62 = vadd.f32 %v1954_v59, %v1953_v57  ;;  %v5389_v57 = vld [vmem:[#allocation22 + $0x38] sm:$0xff]   ;;  %v5391_v59 = vld [vmem:[#allocation22 + $0x30] sm:$0xff]   ;;  %v5392_v60 = vld [vmem:[#allocation22 + $0x68] sm:$0xff]  }
 0x3f8   : > { %v2041_v3 = vpack.c.bf16 %v1957_v61, %v1957_v61  ;;  %v1958_v7 = vmul.f32 0.125, %v1955_v62  ;;  %v5393_v61 = vld [vmem:[#allocation22 + $0x28] sm:$0xff]   ;;  %v5394_v62 = vld [vmem:[#allocation22 + $0x60] sm:$0xff]  }
 0x3fa   : > { %2489 = vmatprep.mubr.bf16.mxu0 %v2041_v3  ;;  %v2042_v9 = vpack.c.bf16 %v1958_v7, %v1958_v7  ;;  %v5396_v3 = vld [vmem:[#allocation22 + $0x58] sm:$0xff]   ;;  %v5399_v7 = vld [vmem:[#allocation22 + $0x10] sm:$0xff]  }
 0x3fb   : > { %2490 = vmatmul.mubr.bf16.vlgmr.msra.gmra.mxu0 %v5334_v63  ;;  %v5395_v63 = vld [vmem:[#allocation22 + $0x20] sm:$0xff]  }
 0x3fc   : > { %2540 = vmatpush1.bf16.msra.mxu0 %v5331_v6  ;;  %2531 = vmatmul.mubr.bf16.vlgmr.msra.gmra.mxu1 %v2042_v9  ;;  %v5397_v6 = vld [vmem:[#allocation22 + $0x18] sm:$0xff]   ;;  %v5401_v9 = vld [vmem:[#allocation22 + $0x8] sm:$0xff]  }
 0x3fd   : > { %4640 = vmatpush3.bf16.msra.mxu1 %v5336_v8  ;;  %2749 = vmatprep.mubr.bf16.mxu1 %v6591_v2  ;;  %v5351_v2 = vld [vmem:[#allocation16 + $0x20] sm:$0xff]   ;;  %v5400_v8 = vld [vmem:[#allocation22 + $0x48] sm:$0xff]  }
 0x3fe   : > { %2541 = vmatprep.subr.bf16.mxu0 %v5339_v11  ;;  %4641 = vmatprep.subr.bf16.mxu1 %v5340_v12  ;;  %v5402_v11 = vld [vmem:[#allocation22 + $0x40] sm:$0xff]  }
 0x3ff   : > { %2571 = vmatprep.mubr.bf16.mxu0 %v6077_v0  ;;  %v5356_v0 = vld [vmem:[#allocation16 + $0x18] sm:$0xff]   ;;  %v5403_v12 = vld [vmem:[#allocation22] sm:$0xff]  }
 0x400   : > { %2542 = vmatpush1.bf16.msra.mxu0 %v5337_v13 }
 0x401   : > { %4642 = vmatpush3.bf16.msra.mxu1 %v5341_v14  ;;  %2543 = vmatprep.subr.bf16.mxu0 %v5344_v15 }
 0x402   : > { %4643 = vmatprep.subr.bf16.mxu1 %v5345_v16 }
 0x404   : > { %2544 = vmatpush1.bf16.msra.mxu0 %v5342_v17 }
 0x405   : > { %4644 = vmatpush3.bf16.msra.mxu1 %v5346_v18  ;;  %2545 = vmatprep.subr.bf16.mxu0 %v5349_v19 }
 0x406   : > { %4645 = vmatprep.subr.bf16.mxu1 %v5350_v20 }
 0x408   : > { %2546 = vmatpush1.bf16.msra.mxu0 %v5347_v21  ;;  %v2045_v21 = vld [vmem:[#allocation14] sm:$0x3] }
 0x409   : > { %4646 = vmatpush3.bf16.msra.mxu1 %v5351_v2  ;;  %2547 = vmatprep.subr.bf16.mxu0 %v5354_v22  ;;  %v2450_v2 = vrot.slane %v2045_v21, %v6587_v49  ;;  %v2454_v22 = vrot.slane %v2045_v21, %v6585_v48 }
 0x40a   : > { %4647 = vmatprep.subr.bf16.mxu1 %v5355_v23 }
 0x40c   : > { %2548 = vmatpush1.bf16.msra.mxu0 %v5352_v24 }
 0x40d   : > { %4648 = vmatpush3.bf16.msra.mxu1 %v5356_v0  ;;  %2549 = vmatprep.subr.bf16.mxu0 %v5359_v25 }
 0x40e   : > { %4649 = vmatprep.subr.bf16.mxu1 %v5360_v26 }
 0x410   : > { %2550 = vmatpush1.bf16.msra.mxu0 %v5357_v27 }
 0x411   : > { %4650 = vmatpush3.bf16.msra.mxu1 %v5361_v28  ;;  %2551 = vmatprep.subr.bf16.mxu0 %v5364_v29 }
 0x412   : > { %4651 = vmatprep.subr.bf16.mxu1 %v5365_v30 }
 0x414   : > { %2552 = vmatpush1.bf16.msra.mxu0 %v5362_v31 }
 0x415   : > { %4652 = vmatpush3.bf16.msra.mxu1 %v5366_v32  ;;  %2553 = vmatprep.subr.bf16.mxu0 %v5369_v33 }
 0x416   : > { %4653 = vmatprep.subr.bf16.mxu1 %v5370_v34 }
 0x418   : > { %2554 = vmatpush1.bf16.msra.mxu0 %v5367_v35 }
 0x419   : > { %4654 = vmatpush3.bf16.msra.mxu1 %v5371_v36  ;;  %v4510_v36 = vld [vmem:[#allocation17] ss:$0 sm:$0xff] }
 0x41a   : > { %4664 = vmatprep.subr.bf16.mxu1 %v5372_v37 }
 0x41b   : > { %2572 = vmatmul.mubr.bf16.vlgmr.msra.gmra.mxu0 %v2044_v38 }
 0x41c   : > { %2750 = vmatmul.mubr.bf16.vlgmr.msra.gmra.mxu1 %v6593_v4  ;;  %4803 = vmatprep.mubr.msk.bf16.mxu0 %vm1263_vm0, %v6597_v5  ;;  %v5382_v4 = vld [vmem:[#allocation19 + $0x50] sm:$0xff]   ;;  %v5384_v5 = vld [vmem:[#allocation19 + $0x48] sm:$0xff]  }
 0x41d   : > { %4665 = vmatpush3.bf16.msra.mxu1 %v5373_v39  ;;  %3108 = vmatprep.mubr.bf16.mxu1 %v2874_v41 }
 0x41e   : > { %4666 = vmatprep.subr.bf16.mxu1 %v5374_v40 }
 0x421   : > { %4667 = vmatpush3.bf16.msra.mxu1 %v5375_v42 }
 0x422   : > { %4668 = vmatprep.subr.bf16.mxu1 %v5376_v44 }
 0x425   : > { %4669 = vmatpush3.bf16.msra.mxu1 %v5377_v1 }
 0x426   : > { %4670 = vmatprep.subr.bf16.mxu1 %v5378_v45 }
 0x429   : > { %4671 = vmatpush3.bf16.msra.mxu1 %v5379_v46  ;;  %v5404_v46 = vld [vmem:[#allocation19 + $0xf8] sm:$0xff]  }
 0x42a   : > { %4672 = vmatprep.subr.bf16.mxu1 %v5380_v50  ;;  %v5405_v50 = vld [vmem:[#allocation19 + $0xb8] sm:$0xff]  }
 0x42d   : > { %4673 = vmatpush3.bf16.msra.mxu1 %v5381_v47  ;;  %v5406_v47 = vld [vmem:[#allocation19 + $0xf0] sm:$0xff]  }
 0x42e   : > { %4674 = vmatprep.subr.bf16.mxu1 %v5382_v4  ;;  %v5407_v4 = vld [vmem:[#allocation19 + $0xb0] sm:$0xff]  }
 0x431   : > { %4675 = vmatpush3.bf16.msra.mxu1 %v5383_v51  ;;  %v5408_v51 = vld [vmem:[#allocation19 + $0xe8] sm:$0xff]  }
 0x432   : > { %4676 = vmatprep.subr.bf16.mxu1 %v5384_v5  ;;  %v5409_v5 = vld [vmem:[#allocation19 + $0xa8] sm:$0xff]  }
 0x435   : > { %4677 = vmatpush3.bf16.msra.mxu1 %v5385_v52  ;;  %v5410_v52 = vld [vmem:[#allocation19 + $0xe0] sm:$0xff]  }
 0x436   : > { %4678 = vmatprep.subr.bf16.mxu1 %v5386_v53 }
 0x439   : > { %4679 = vmatpush3.bf16.msra.mxu1 %v5387_v54 }
 0x43a   : > { %4708 = vmatprep.subr.bf16.mxu1 %v5388_v56 }
 0x43c   : > { %3109 = vmatmul.mubr.bf16.vlgmr.msra.gmra.mxu1 %v2873_v55 }
 0x43d   : > { %4709 = vmatpush3.bf16.msra.mxu1 %v5389_v57 }
 0x43e   : > { %4710 = vmatprep.subr.bf16.mxu1 %v5390_v58  ;;  %v5411_v58 = vld [vmem:[#allocation19 + $0xa0] sm:$0xff]  }
 0x441   : > { %4711 = vmatpush3.bf16.msra.mxu1 %v5391_v59  ;;  %v5412_v59 = vld [vmem:[#allocation19 + $0xd8] sm:$0xff]  }
 0x442   : > { %4712 = vmatprep.subr.bf16.mxu1 %v5392_v60  ;;  %v5414_v60 = vld [vmem:[#allocation19 + $0xd0] sm:$0xff]  }
 0x445   : > { %4713 = vmatpush3.bf16.msra.mxu1 %v5393_v61  ;;  %v5415_v61 = vld [vmem:[#allocation19 + $0x90] sm:$0xff]  }
 0x446   : > { %4714 = vmatprep.subr.bf16.mxu1 %v5394_v62  ;;  %v5416_v62 = vld [vmem:[#allocation19 + $0xc8] sm:$0xff]  }
 0x449   : > { %4715 = vmatpush3.bf16.msra.mxu1 %v5395_v63  ;;  %v5417_v63 = vld [vmem:[#allocation19 + $0x88] sm:$0xff]  }
 0x44a   : > { %4716 = vmatprep.subr.bf16.mxu1 %v5396_v3  ;;  %v5418_v3 = vld [vmem:[#allocation19 + $0xc0] sm:$0xff]  }
 0x44d   : > { %4717 = vmatpush3.bf16.msra.mxu1 %v5397_v6  ;;  %v5419_v6 = vld [vmem:[#allocation19 + $0x80] sm:$0xff]  }
 0x44e   : > { %4718 = vmatprep.subr.bf16.mxu1 %v5398_v43  ;;  %v5420_v43 = vld [vmem:[#allocation22 + $0xf8] sm:$0xff]  }
 0x451   : > { %4719 = vmatpush3.bf16.msra.mxu1 %v5399_v7 }
 0x452   : > { %4720 = vmatprep.subr.bf16.mxu1 %v5400_v8 }
 0x455   : > { %4721 = vmatpush3.bf16.msra.mxu1 %v5401_v9 }
 0x456   : > { %4722 = vmatprep.subr.bf16.mxu1 %v5402_v11 }
 0x459   : > { %4723 = vmatpush3.bf16.msra.mxu1 %v5403_v12 }
 0x4bb   : > { %v2491_v13 = vpop.f32.mrf.mxu0 }
 0x4bc   : > { %v2532_v14 = vpop.f32.mrf.mxu1  ;;  %v2492_v23 = vadd.f32 %v2491_v13, %v2450_v2  ;;  %v5423_v2 = vld [vmem:[#allocation22 + $0xb0] sm:$0xff]  }
 0x4bd   : > { %v2493_v15 = vpop.f32.mrf.mxu0 }
 0x4be   : > { %v2534_v16 = vpop.f32.mrf.mxu1  ;;  %v2494_v24 = vadd.f32 %v2493_v15, %v2454_v22  ;;  %v2533_v0 = vadd.f32 %v2532_v14, %v2492_v23  ;;  %v5424_v22 = vld [vmem:[#allocation22 + $0xe8] sm:$0xff]  }
 0x4bf   : > { %v2495_v17 = vpop.f32.mrf.mxu0  ;;  %v5425_v23 = vld [vmem:[#allocation22 + $0xa8] sm:$0xff]  }
 0x4c0   : > { %v2536_v18 = vpop.f32.mrf.mxu1  ;;  %v2535_v26 = vadd.f32 %v2534_v16, %v2494_v24  ;;  %v5426_v24 = vld [vmem:[#allocation22 + $0xe0] sm:$0xff]  }
 0x4c1   : > { %v2496_v19 = vpop.f32.mrf.mxu0  ;;  %v5421_v18 = vld [vmem:[#allocation22 + $0xb8] sm:$0xff]  }
 0x4c2   : > { %v2537_v20 = vpop.f32.mrf.mxu1 }
 0x4c3   : > { %v5422_v20 = vld [vmem:[#allocation22 + $0xf0] sm:$0xff]  }
 0x4db   : > { %v2573_v25 = vpop.f32.mrf.mxu0 }
 0x4dc   : > { %v2574_v27 = vadd.f32 %v2573_v25, %v2533_v0  ;;  %v4655_v28 = vpop.f32.mrf.mxu1  ;;  %v5427_v0 = vld [vmem:[#allocation22 + $0xa0] sm:$0xff]   ;;  %v5428_v25 = vld [vmem:[#allocation22 + $0xd8] sm:$0xff]  }
 0x4dd   : > { %v2575_v29 = vpop.f32.mrf.mxu0 }
 0x4de   : > { %v2576_v30 = vadd.f32 %v2575_v29, %v2535_v26  ;;  %v4656_v31 = vpop.f32.mrf.mxu1  ;;  %v2580_v32 = vmax.f32 %v2574_v27, 0.0  ;;  %v5429_v26 = vld [vmem:[#allocation22 + $0x98] sm:$0xff]   ;;  %v5430_v27 = vld [vmem:[#allocation22 + $0xd0] sm:$0xff]   ;;  %v5432_v29 = vld [vmem:[#allocation22 + $0xc8] sm:$0xff]  }
 0x4df   : > { %v4657_v33 = vadd.f32 %v4656_v31, %v4655_v28  ;;  %v2577_v34 = vpop.f32.mrf.mxu0  ;;  %v5431_v28 = vld [vmem:[#allocation22 + $0x90] sm:$0xff]   ;;  %v5434_v31 = vld [vmem:[#allocation22 + $0xc0] sm:$0xff]  }
 0x4e0   : > { %v2581_v35 = vmax.f32 %v2576_v30, 0.0  ;;  %v4658_v37 = vpop.f32.mrf.mxu1  ;;  %v3228_v48 = vpack.c.bf16 %v2580_v32, %v2580_v32  ;;  %v5433_v30 = vld [vmem:[#allocation22 + $0x88] sm:$0xff]   ;;  %v5435_v32 = vld [vmem:[#allocation22 + $0x80] sm:$0xff]   ;;  %v6078_v34 = vmov 0.0  }
 0x4e1   : > { %v2578_v38 = vpop.f32.mrf.mxu0  ;;  %v2752_v40 = vadd.f32 %v4657_v33, %v4510_v36  ;;  %v5436_v33 = vld [vmem:[%s6901_s13 + $0x38] sm:$0xff]   ;;  %4807 = vmatprep.subr.bf16.mxu1 %v6078_v34 }
 0x4e2   : > { %v3229_v49 = vpack.c.bf16 %v2581_v35, %v2581_v35  ;;  %v4659_v39 = vpop.f32.mrf.mxu1  ;;  %v5437_v35 = vld [vmem:[%s6901_s13 + $0x30] sm:$0xff]   ;;  %v5440_v38 = vld [vmem:[%s6901_s13 + $0x18] sm:$0xff]  }
 0x4e3   : > { %v4660_v41 = vadd.f32 %v4659_v39, %v4658_v37  ;;  %v2758_v44 = vmax.f32 %v2752_v40, 0.0  ;;  %v5439_v37 = vld [vmem:[%s6901_s13 + $0x20] sm:$0xff]  }
 0x4e4   : > { %3457 = vmatprep.mubr.bf16.mxu1 %v3229_v49  ;;  %v4529_v49 = vld [vmem:[#allocation20] ss:$0 sm:$0xff] }
 0x4e5   : > { %v2755_v42 = vadd.f32 %v4660_v41, %v4510_v36  ;;  %3458 = vmatmul.mubr.bf16.vlgmr.msra.gmra.mxu1 %v3228_v48  ;;  %v5438_v36 = vld [vmem:[%s6901_s13 + $0x28] sm:$0xff]  }
 0x4e6   : > { %4808 = vmatpush3.bf16.msra.mxu1 %v5436_v33  ;;  %4823 = vmatprep.mubr.msk.bf16.mxu1 %vm6079_vm1, %v6078_v34 }
 0x4e7   : > { %v2759_v1 = vmax.f32 %v2755_v42, 0.0  ;;  %4809 = vmatprep.subr.bf16.mxu1 %v6078_v34 }
 0x4e9   : > { %v2760_v45 = vpack.c.bf16 %v2759_v1, %v2758_v44 }
 0x4ea   : > { %4810 = vmatpush3.bf16.msra.mxu1 %v5437_v35  ;;  %v5466_v35 = vld [vmem:[%s6903_s9 + $0x10] sm:$0xff]  }
 0x4eb   : > { %4801 = vmatprep.subr.bf16.mxu0 %v2760_v45  ;;  %4811 = vmatprep.subr.bf16.mxu1 %v6078_v34 }
 0x4ec   : > { %4802 = vmatpush3.bf16.msra.mxu0 %v2760_v45 }
 0x4ed   : > { %4686 = vmatprep.subr.bf16.mxu0 %v5404_v46 }
 0x4ee   : > { %4812 = vmatpush3.bf16.msra.mxu1 %v5438_v36  ;;  %v5467_v36 = vld [vmem:[%s6903_s9 + $0x8] sm:$0xff]  }
 0x4ef   : > { %4804 = vmatmul.mubr.msk.bf16.vlgmr.msra.gmra.mxu0 %vm1263_vm0, %v6604_v10  ;;  %v5413_v10 = vld [vmem:[#allocation19 + $0x98] sm:$0xff]   ;;  %4813 = vmatprep.subr.bf16.mxu1 %v6078_v34 }
 0x4f0   : > { %4687 = vmatpush3.bf16.msra.mxu0 %v5405_v50 }
 0x4f1   : > { %4688 = vmatprep.subr.bf16.mxu0 %v5406_v47 }
 0x4f2   : > { %4814 = vmatpush3.bf16.msra.mxu1 %v5439_v37  ;;  %v5468_v37 = vld [vmem:[%s6903_s9] sm:$0xff]  }
 0x4f3   : > { %4815 = vmatprep.subr.bf16.mxu1 %v6078_v34 }
 0x4f4   : > { %4689 = vmatpush3.bf16.msra.mxu0 %v5407_v4 }
 0x4f5   : > { %4690 = vmatprep.subr.bf16.mxu0 %v5408_v51 }
 0x4f6   : > { %4816 = vmatpush3.bf16.msra.mxu1 %v5440_v38  ;;  %v5469_v38 = vld [vmem:[#allocation29 + $0x38] sm:$0xff]  }
 0x4f7   : > { %4817 = vmatprep.subr.bf16.mxu1 %v6078_v34 }
 0x4f8   : > { %4691 = vmatpush3.bf16.msra.mxu0 %v5409_v5 }
 0x4f9   : > { %4692 = vmatprep.subr.bf16.mxu0 %v5410_v52 }
 0x4fc   : > { %v4680_v53 = vpop.f32.mrf.mxu1  ;;  %4693 = vmatpush3.bf16.msra.mxu0 %v5411_v58  ;;  %v5445_v58 = vld [vmem:[#allocation26 + $0x38] sm:$0xff]  }
 0x4fd   : > { %4694 = vmatprep.subr.bf16.mxu0 %v5412_v59  ;;  %v5446_v59 = vld [vmem:[#allocation26 + $0x70] sm:$0xff]  }
 0x4fe   : > { %v4681_v54 = vpop.f32.mrf.mxu1 }
 0x4ff   : > { %v6646_v55 = vadd.f32 %v4681_v54, %v4680_v53  ;;  %v5441_v54 = vld [vmem:[%s6901_s13 + $0x10] sm:$0xff]  }
 0x500   : > { %v4683_v56 = vpop.f32.mrf.mxu1  ;;  %4695 = vmatpush3.bf16.msra.mxu0 %v5413_v10  ;;  %4818 = vmatpush3.bf16.msra.mxu1 %v5441_v54  ;;  %v5447_v10 = vld [vmem:[#allocation26 + $0x30] sm:$0xff]  }
 0x501   : > { %4696 = vmatprep.subr.bf16.mxu0 %v5414_v60  ;;  %v3111_v40 = vadd.f32 %v6646_v55, %v4529_v49  ;;  %4819 = vmatprep.subr.bf16.mxu1 %v6078_v34  ;;  %v5442_v55 = vld [vmem:[%s6901_s13 + $0x8] sm:$0xff]   ;;  %v5443_v56 = vld [vmem:[%s6901_s13] sm:$0xff]   ;;  %v5470_v49 = vld [vmem:[#allocation29 + $0x30] sm:$0xff]  }
 0x502   : > { %v4684_v57 = vpop.f32.mrf.mxu1  ;;  %v5448_v60 = vld [vmem:[#allocation26 + $0x68] sm:$0xff]  }
 0x503   : > { %v5444_v57 = vld [vmem:[#allocation26 + $0x78] sm:$0xff]  }
 0x504   : > { %4697 = vmatpush3.bf16.msra.mxu0 %v5415_v61  ;;  %4820 = vmatpush3.bf16.msra.mxu1 %v5442_v55  ;;  %v5449_v61 = vld [vmem:[#allocation26 + $0x28] sm:$0xff]  }
 0x505   : > { %4698 = vmatprep.subr.bf16.mxu0 %v5416_v62  ;;  %4821 = vmatprep.subr.bf16.mxu1 %v6078_v34  ;;  %v5450_v62 = vld [vmem:[#allocation26 + $0x60] sm:$0xff]  }
 0x508   : > { %4699 = vmatpush3.bf16.msra.mxu0 %v5417_v63  ;;  %4822 = vmatpush3.bf16.msra.mxu1 %v5443_v56  ;;  %v5451_v63 = vld [vmem:[#allocation26 + $0x20] sm:$0xff]  }
 0x509   : > { %4700 = vmatprep.subr.bf16.mxu0 %v5418_v3  ;;  %4827 = vmatprep.subr.bf16.mxu1 %v6078_v34  ;;  %v5452_v3 = vld [vmem:[#allocation26 + $0x58] sm:$0xff]  }
 0x50c   : > { %4701 = vmatpush3.bf16.msra.mxu0 %v5419_v6  ;;  %v5453_v6 = vld [vmem:[#allocation26 + $0x18] sm:$0xff]  }
 0x50d   : > { %4730 = vmatprep.subr.bf16.mxu0 %v5420_v43  ;;  %v5454_v43 = vld [vmem:[#allocation26 + $0x50] sm:$0xff]  }
 0x5a5   : > { %v4724_v7 = vpop.f32.mrf.mxu1 }
 0x5a7   : > { %v4725_v8 = vpop.f32.mrf.mxu1 }
 0x5a8   : > { %v6648_v9 = vadd.f32 %v4725_v8, %v4724_v7  ;;  %v5455_v7 = vld [vmem:[#allocation26 + $0x10] sm:$0xff]   ;;  %v5456_v8 = vld [vmem:[#allocation26 + $0x48] sm:$0xff]  }
 0x5a9   : > { %v4727_v11 = vpop.f32.mrf.mxu1 }
 0x5aa   : > { %v5457_v11 = vld [vmem:[#allocation26 + $0x8] sm:$0xff]  }
 0x5ab   : > { %v4728_v12 = vpop.f32.mrf.mxu1 }
 0x5ac   : > { %v3232_v12 = vld [vmem:[#allocation23] sm:$0x1] }
 0x5af   : > { %v4805_v13 = vpop.f32.mrf.mxu0 }
 0x5b0   : > { %v3231_v21 = vpack.c.bf16 %v4805_v13, %v4805_v13 }
 0x5b1   : > { %v2795_v14 = vpop.f32.mrf.mxu0 }
 0x5b2   : > { %v2875_v19 = vpack.c.bf16 %v2795_v14, %v2795_v14 }
 0x5b3   : > { %v4806_v15 = vpop.f32.mrf.mxu0 }
 0x5b4   : > { %v3460_v15 = vadd.f32 %v6648_v9, %v3232_v12  ;;  %v5461_v9 = vld [vmem:[%s6903_s9 + $0x38] sm:$0xff]  }
 0x5b5   : > { %v2798_v16 = vpop.f32.mrf.mxu0 }
 0x5b6   : > { %v2876_v17 = vpack.c.bf16 %v2798_v16, %v2798_v16 }
 0x5b8   : > { %3148 = vmatprep.mubr.bf16.mxu0 %v2876_v17 }
 0x5b9   : > { %3149 = vmatmul.mubr.bf16.vlgmr.msra.gmra.mxu0 %v2875_v19 }
 0x5ba   : > { %3497 = vmatprep.mubr.bf16.mxu0 %v3231_v21  ;;  %4731 = vmatpush3.bf16.msra.mxu0 %v5421_v18 }
 0x5bb   : > { %4732 = vmatprep.subr.bf16.mxu0 %v5422_v20 }
 0x5be   : > { %4733 = vmatpush3.bf16.msra.mxu0 %v5423_v2  ;;  %v5458_v2 = vld [vmem:[#allocation26 + $0x40] sm:$0xff]  }
 0x5bf   : > { %4734 = vmatprep.subr.bf16.mxu0 %v5424_v22  ;;  %v5459_v22 = vld [vmem:[#allocation26] sm:$0xff]  }
 0x5c2   : > { %4735 = vmatpush3.bf16.msra.mxu0 %v5425_v23  ;;  %v5460_v23 = vld [vmem:[%s1082_s17] ss:$0 sps:$4 sm:$0x11]   ;;  %s4000_s17 = scalar_lea.sflag [#allocation4], %s6518_s19 }
 0x5c3   : > { %4736 = vmatprep.subr.bf16.mxu0 %v5426_v24  ;;  %v5462_v24 = vld [vmem:[%s6903_s9 + $0x30] sm:$0xff]  }
 0x5c6   : > { %4737 = vmatpush3.bf16.msra.mxu0 %v5427_v0  ;;  %v5463_v0 = vld [vmem:[%s6903_s9 + $0x28] sm:$0xff]  }
 0x5c7   : > { %4738 = vmatprep.subr.bf16.mxu0 %v5428_v25  ;;  %v5464_v25 = vld [vmem:[%s6903_s9 + $0x20] sm:$0xff]  }
 0x5ca   : > { %4739 = vmatpush3.bf16.msra.mxu0 %v5429_v26  ;;  %v5465_v26 = vld [vmem:[%s6903_s9 + $0x18] sm:$0xff]  }
 0x5cb   : > { %4740 = vmatprep.subr.bf16.mxu0 %v5430_v27  ;;  %v3523_v27 = vld [vmem:[#allocation25] sm:$0x1] }
 0x5ce   : > { %4741 = vmatpush3.bf16.msra.mxu0 %v5431_v28 }
 0x5cf   : > { %4742 = vmatprep.subr.bf16.mxu0 %v5432_v29 }
 0x5d2   : > { %4743 = vmatpush3.bf16.msra.mxu0 %v5433_v30 }
 0x5d3   : > { %4744 = vmatprep.subr.bf16.mxu0 %v5434_v31 }
 0x5d6   : > { %4745 = vmatpush3.bf16.msra.mxu0 %v5435_v32 }
 0x5d7   : > { %4761 = vmatprep.subr.bf16.mxu0 %v5444_v57 }
 0x679   : > { %v4702_v39 = vpop.f32.mrf.mxu0 }
 0x67b   : > { %v4703_v48 = vpop.f32.mrf.mxu0 }
 0x67c   : > { %v4704_v41 = vadd.f32 %v4703_v48, %v4702_v39  ;;  %v5471_v39 = vld [vmem:[#allocation29 + $0x28] sm:$0xff]   ;;  %v5472_v48 = vld [vmem:[#allocation29 + $0x20] sm:$0xff]  }
 0x67d   : > { %v4705_v42 = vpop.f32.mrf.mxu0 }
 0x67e   : > { %v3151_v44 = vadd.f32 %v4704_v41, %v3111_v40  ;;  %v5473_v40 = vld [vmem:[#allocation29 + $0x18] sm:$0xff]   ;;  %v5474_v41 = vld [vmem:[#allocation29 + $0x10] sm:$0xff]  }
 0x67f   : > { %v4706_v1 = vpop.f32.mrf.mxu0 }
 0x680   : > { %v3156_v45 = vmax.f32 %v3151_v44, 0.0  ;;  %v3647_v44 = vld [vmem:[#allocation28] sm:$0x1] }
 0x682   : > { %v3157_v46 = vrot.slane %v3156_v45, 4 }
 0x684   : > { %v3158_v50 = vadd.f32 %v3157_v46, %v3156_v45 }
 0x686   : > { %v3159_v47 = vrot.slane %v3158_v50, 2 }
 0x688   : > { %v3160_v4 = vadd.f32 %v3159_v47, %v3158_v50 }
 0x68a   : > { %v3161_v51 = vrot.slane %v3160_v4, 1 }
 0x68c   : > { %v3162_v5 = vadd.f32 %v3161_v51, %v3160_v4 }
 0x68e   : > { %v3163_v52 = vmul.f32 0.125, %v3162_v5  ;;  %v5475_v5 = vld [vmem:[#allocation29 + $0x8] sm:$0xff]  }
 0x690   : > { %v3230_v53 = vpack.c.bf16 %v3163_v52, %v3163_v52  ;;  %v5476_v52 = vld [vmem:[#allocation29] sm:$0xff]  }
 0x692   : > { %3498 = vmatmul.mubr.bf16.vlgmr.msra.gmra.mxu0 %v3230_v53  ;;  %v3802_v53 = vld [vmem:[%s6904_s4] sm:$0x1] }
 0x693   : > { %4762 = vmatpush3.bf16.msra.mxu0 %v5445_v58  ;;  %3776 = vmatprep.mubr.bf16.mxu0 %v5460_v23 }
 0x694   : > { %4763 = vmatprep.subr.bf16.mxu0 %v5446_v59 }
 0x697   : > { %4764 = vmatpush3.bf16.msra.mxu0 %v5447_v10 }
 0x698   : > { %4765 = vmatprep.subr.bf16.mxu0 %v5448_v60 }
 0x69b   : > { %4766 = vmatpush3.bf16.msra.mxu0 %v5449_v61 }
 0x69c   : > { %4767 = vmatprep.subr.bf16.mxu0 %v5450_v62 }
 0x69f   : > { %4768 = vmatpush3.bf16.msra.mxu0 %v5451_v63 }
 0x6a0   : > { %4769 = vmatprep.subr.bf16.mxu0 %v5452_v3 }
 0x6a3   : > { %4770 = vmatpush3.bf16.msra.mxu0 %v5453_v6 }
 0x6a4   : > { %4771 = vmatprep.subr.bf16.mxu0 %v5454_v43 }
 0x6a7   : > { %4772 = vmatpush3.bf16.msra.mxu0 %v5455_v7 }
 0x6a8   : > { %4773 = vmatprep.subr.bf16.mxu0 %v5456_v8 }
 0x6ab   : > { %4774 = vmatpush3.bf16.msra.mxu0 %v5457_v11 }
 0x6ac   : > { %4775 = vmatprep.subr.bf16.mxu0 %v5458_v2 }
 0x6af   : > { %4776 = vmatpush3.bf16.msra.mxu0 %v5459_v22 }
 0x6b0   : > { %4847 = vmatprep.subr.bf16.mxu0 %v6078_v34 }
 0x752   : > { %v4746_v13 = vpop.f32.mrf.mxu0 }
 0x754   : > { %v4747_v14 = vpop.f32.mrf.mxu0 }
 0x755   : > { %v4748_v16 = vadd.f32 %v4747_v14, %v4746_v13 }
 0x756   : > { %v4749_v17 = vpop.f32.mrf.mxu0 }
 0x757   : > { %v3500_v18 = vadd.f32 %v4748_v16, %v3460_v15 }
 0x758   : > { %v4750_v19 = vpop.f32.mrf.mxu0 }
 0x759   : > { %v3505_v20 = vmax.f32 %v3500_v18, 0.0 }
 0x75b   : > { %v3522_v21 = vpack.c.bf16 %v3505_v20, %v3505_v20 }
 0x75d   : > { %4824 = vmatmul.mubr.bf16.vlgmr.msra.gmra.mxu1 %v3522_v21 }
 0x75e   : > { %4843 = vmatprep.mubr.msk.bf16.mxu1 %vm6079_vm1, %v6078_v34  ;;  %4828 = vmatpush3.bf16.msra.mxu1 %v5461_v9 }
 0x75f   : > { %4829 = vmatprep.subr.bf16.mxu1 %v6078_v34 }
 0x762   : > { %4830 = vmatpush3.bf16.msra.mxu1 %v5462_v24 }
 0x763   : > { %4831 = vmatprep.subr.bf16.mxu1 %v6078_v34 }
 0x766   : > { %4832 = vmatpush3.bf16.msra.mxu1 %v5463_v0 }
 0x767   : > { %4833 = vmatprep.subr.bf16.mxu1 %v6078_v34 }
 0x76a   : > { %4834 = vmatpush3.bf16.msra.mxu1 %v5464_v25 }
 0x76b   : > { %4835 = vmatprep.subr.bf16.mxu1 %v6078_v34 }
 0x76e   : > { %4836 = vmatpush3.bf16.msra.mxu1 %v5465_v26 }
 0x76f   : > { %4837 = vmatprep.subr.bf16.mxu1 %v6078_v34 }
 0x772   : > { %4838 = vmatpush3.bf16.msra.mxu1 %v5466_v35 }
 0x773   : > { %4839 = vmatprep.subr.bf16.mxu1 %v6078_v34 }
 0x776   : > { %4840 = vmatpush3.bf16.msra.mxu1 %v5467_v36 }
 0x777   : > { %4841 = vmatprep.subr.bf16.mxu1 %v6078_v34 }
 0x77a   : > { %4842 = vmatpush3.bf16.msra.mxu1 %v5468_v37 }
 0x81d   : > { %v3606_v28 = vpop.f32.mrf.mxu1 }
 0x81e   : > { %v3607_v29 = vadd.f32 %v3606_v28, %v3523_v27 }
 0x81f   : > { %v4825_v30 = vpop.f32.mrf.mxu1 }
 0x820   : > { %v3645_v31 = vpack.c.bf16 %v3607_v29, %v3607_v29 }
 0x821   : > { %v3609_v32 = vpop.f32.mrf.mxu1 }
 0x822   : > { %3777 = vmatmul.mubr.bf16.vlgmr.msra.gmra.mxu0 %v3645_v31 }
 0x823   : > { %v4826_v33 = vpop.f32.mrf.mxu1  ;;  %4863 = vmatprep.mubr.msk.bf16.mxu0 %vm6079_vm1, %v6078_v34  ;;  %4848 = vmatpush3.bf16.msra.mxu0 %v5469_v38 }
 0x824   : > { %4849 = vmatprep.subr.bf16.mxu0 %v6078_v34 }
 0x827   : > { %4850 = vmatpush3.bf16.msra.mxu0 %v5470_v49 }
 0x828   : > { %4851 = vmatprep.subr.bf16.mxu0 %v6078_v34 }
 0x82b   : > { %4852 = vmatpush3.bf16.msra.mxu0 %v5471_v39 }
 0x82c   : > { %4853 = vmatprep.subr.bf16.mxu0 %v6078_v34 }
 0x82f   : > { %4854 = vmatpush3.bf16.msra.mxu0 %v5472_v48 }
 0x830   : > { %4855 = vmatprep.subr.bf16.mxu0 %v6078_v34 }
 0x833   : > { %4856 = vmatpush3.bf16.msra.mxu0 %v5473_v40 }
 0x834   : > { %4857 = vmatprep.subr.bf16.mxu0 %v6078_v34 }
 0x837   : > { %4858 = vmatpush3.bf16.msra.mxu0 %v5474_v41 }
 0x838   : > { %4859 = vmatprep.subr.bf16.mxu0 %v6078_v34 }
 0x83b   : > { %4860 = vmatpush3.bf16.msra.mxu0 %v5475_v5 }
 0x83c   : > { %4861 = vmatprep.subr.bf16.mxu0 %v6078_v34  ;;  %v3909_v34 = vld [vmem:[%s6905_s28] sm:$0x1] }
 0x83f   : > { %4862 = vmatpush3.bf16.msra.mxu0 %v5476_v52 }
 0x8e2   : > { %v4777_v42 = vpop.f32.mrf.mxu0 }
 0x8e4   : > { %v4778_v1 = vpop.f32.mrf.mxu0 }
 0x8e5   : > { %v4779_v45 = vadd.f32 %v4778_v1, %v4777_v42 }
 0x8e6   : > { %v4780_v46 = vpop.f32.mrf.mxu0 }
 0x8e7   : > { %v3779_v50 = vadd.f32 %v4779_v45, %v3647_v44 }
 0x8e8   : > { %v4781_v47 = vpop.f32.mrf.mxu0 }
 0x8e9   : > { %v3784_v4 = vmax.f32 %v3779_v50, 0.0 }
 0x8eb   : > { %v3801_v51 = vpack.c.bf16 %v3784_v4, %v3784_v4 }
 0x8ed   : > { %4844 = vmatmul.mubr.bf16.vlgmr.msra.gmra.mxu1 %v3801_v51 }
 0x9ad   : > { %v3885_v54 = vpop.f32.mrf.mxu1 }
 0x9ae   : > { %v3886_v55 = vadd.f32 %v3885_v54, %v3802_v53 }
 0x9af   : > { %v4845_v56 = vpop.f32.mrf.mxu1 }
 0x9b0   : > { %v3891_v57 = vmax.f32 %v3886_v55, 0.0 }
 0x9b1   : > { %v3888_v58 = vpop.f32.mrf.mxu1 }
 0x9b2   : > { %v3908_v59 = vpack.c.bf16 %v3891_v57, %v3891_v57 }
 0x9b3   : > { %v4846_v10 = vpop.f32.mrf.mxu1 }
 0x9b4   : > { %4864 = vmatmul.mubr.bf16.vlgmr.msra.gmra.mxu0 %v3908_v59 }
 0xa74   : > { %v3992_v60 = vpop.f32.mrf.mxu0 }
 0xa75   : > { %v3993_v61 = vadd.f32 %v3992_v60, %v3909_v34 }
 0xa76   : > { %v4865_v62 = vpop.f32.mrf.mxu0 }
 0xa77   : > { %3998 = vst [vmem:[%s1071_s11] sm:$0x1] %v3993_v61 }
 0xa78   : > { %v3995_v63 = vpop.f32.mrf.mxu0 }
 0xa79   : > { %5962 = shalt.err (!%p5959_p1)
}
 0xa7a   : > { %s5963_s4 = scalar_lea.hbm %s6745_s1, 16  ;;  %s5967_s10 = scalar_lea.hbm %s6906_s18, 64 }
 0xa7b   : > { %p5964_p10 = scmp.ne.s32.totalorder %s6745_s1, %s5963_s4  ;;  %p5968_p9 = scmp.lt.s32.totalorder %s6745_s1, %s6906_s18 }
 0xa7c   : > { %p5969_p13 = scmp.lt.s32.totalorder %s5967_s10, %s5963_s4 }
 0xa7d   : > { %p5965_p3 = pnand %p5964_p10, %p6907_p7 }
 0xa7e   : > { %p5970_p2 = por %p5969_p13, %p5968_p9 }
 0xa7f   : > { %p5966_p11 = pneg %p5965_p3 }
 0xa81   : > { %p5971_p4 = pnand %p5970_p2, %p5966_p11 }
 0xa83   : > { %5974 = shalt.err (!%p5971_p4)
}
 0xa84   : > { %4936 = dma.vmem_to_hbm [thread:$0]  (%p6907_p7), %s6747_s14, 16, %s6745_s1, %s4000_s17   ;;  %v4866_v3 = vpop.f32.mrf.mxu0 }
 0xa85 PF: > { %p5031_p6 = scmp.ge.s32.totalorder %s6053_s30, 2  ;;  %s4024_s11 = sand.u32 1, %s6041_s29  }
 0xa86   : > { %p6908_p12 = scmp.ne.s32.totalorder %s6874_s27, 0  ;;  %s4025_s12 = scalar_lea.sflag [#allocation4], %s4024_s11 }
 0xa88   : > { %p4995_p0 = pnand %p5031_p6, %p6908_p12 }
 0xa8a   : > { %p4996_p5 = pneg %p4995_p0 }
 0xa8c   : > { %6036 = dma.done.wait (%p4996_p5), %s4025_s12, 16  }
 0xa8d   : > { %6038 = vsyncadd (%p4996_p5), %s4025_s12, 4294967280  ;;  %p49_p8 = scmp.ge.s32.totalorder %s6400_s5, 6   ;;  %s6909_s29 = smov %s6045_s2 }
 0xa8e   : > { %s6910_s2 = smov %s6049_s6  ;;  %s6911_s6 = smov %s6411_s3 }
 0xa8f   : > { %s6912_s30 = smov %s6400_s5  ;;  %51 = sbr.rel (!%p49_p8) target bundleno = 40 (0x28), region = 251 }
 0xa94   :  { %4029 = vsyncpa [#allocation3], 1 }
 0xa95   :  { %4031 = vsyncpa [#allocation3 + $0x1], 1 }
 0xa96   :  { %4032 = vsyncpa [#allocation6], 1 }
 0xa97   :  { %4034 = vsyncpa [#allocation6 + $0x1], 1 }
 0xa98   :  { %4035 = vsyncpa [#allocation9], 1 }
 0xa99   :  { %4036 = vsyncpa [#allocation12], 1 }
 0xa9a   :  { %4037 = vsyncpa [#allocation15], 1 }
 0xa9b   :  { %4038 = vsyncpa [#allocation18], 1 }
 0xa9c   :  { %4039 = vsyncpa [#allocation21], 1 }
 0xa9d   :  { %4040 = vsyncpa [#allocation24], 1 }
 0xa9e   :  { %4041 = vsyncpa [#allocation27], 1 }
 0xa9f   :  { %4042 = vsyncpa [#allocation30], 1 }
 0xaa0   :  { %4043 = vsyncpa [#allocation4], 1 }
 0xaa1   :  { %4045 = vsyncpa [#allocation4 + $0x1], 1 }

</bundles_post_ra>
